<compile_context>
chip_gen: v7x
topology: tpu7x:2x2x1
jax: 0.10.0
libtpu: 0.0.40
codegen_flags: <defaults>
</compile_context>

<pallas_src>
import functools

import jax
import jax.numpy as jnp
from jax.experimental import pallas as pl
from jax.experimental.pallas import tpu as pltpu


def conv1x1_bn_kernel(x_ref, w_ref, gamma_ref, beta_ref, o_ref,
                      y_buf, sum_buf, sumsq_buf,
                      *, total_p, tile_p, eps, ragged, bf16_matmul):
    i = pl.program_id(0)

    @pl.when(i == 0)
    def _init():
        sum_buf[...] = jnp.zeros_like(sum_buf)
        sumsq_buf[...] = jnp.zeros_like(sumsq_buf)

    x = x_ref[...]
    w = w_ref[...]
    if bf16_matmul:
        # v5e: no native f32 MXU path; in-VMEM bf16 cast, f32 accumulation.
        x = x.astype(jnp.bfloat16)
        w = w.astype(jnp.bfloat16)

    # 1x1 conv == channel matmul on the MXU, NCHW-native:
    #   (Cout, Cin) @ (Cin, tile_p) -> (Cout, tile_p), f32 accumulation.
    y = jnp.dot(w, x, preferred_element_type=jnp.float32)

    if ragged:
        # Edge tile: zero out-of-range lanes so they corrupt neither the batch
        # statistics nor the cached y (OOB x-block lanes have unspecified contents).
        col = jax.lax.broadcasted_iota(jnp.int32, y.shape, 1)
        y = jnp.where(i * tile_p + col < total_p, y, 0.0)

    off = pl.multiple_of(i * tile_p, tile_p)
    y_buf[:, pl.ds(off, tile_p)] = y

    # One-pass stats reduced over the lane (P) axis.
    sum_buf[...] += jnp.sum(y, axis=1, keepdims=True)
    sumsq_buf[...] += jnp.sum(y * y, axis=1, keepdims=True)

    @pl.when(i == pl.num_programs(0) - 1)
    def _finalize():
        inv_p = jnp.float32(1.0 / total_p)
        mean = sum_buf[...] * inv_p
        # Biased (training-mode) variance; clamp against f32 cancellation.
        var = jnp.maximum(sumsq_buf[...] * inv_p - mean * mean, 0.0)
        scale = gamma_ref[...] * jax.lax.rsqrt(var + eps)
        shift = beta_ref[...] - mean * scale
        # Single broadcasted FMA over the cached y -> lane-dense (Cout, P) block.
        # Pallas writes this pinned output block back to HBM exactly once.
        o_ref[...] = (y_buf[:, :total_p] * scale + shift).astype(o_ref.dtype)


def _pick_tile_p(p):
    # Total HBM traffic is only a few MB, so per-grid-step overhead (~0.35 us) is
    # the binding cost, not VMEM: bias toward large tiles / few steps.
    if p <= 1024:
        return p                      # single full-extent block (always legal)
    for t in (2048, 1920, 1792, 1664, 1536, 1408, 1280, 1152, 1024, 896, 768, 640, 512):
        if p % t == 0:
            return t
    return 1024                       # ragged: cdiv grid + in-kernel edge masking


def _default_bf16_matmul():
    try:
        kind = jax.devices()[0].device_kind.lower()
    except Exception:
        return False
    return ("v5e" in kind) or ("v5 lite" in kind) or ("v5litepod" in kind)


def conv1x1_bn(x_nchw, w_oihw, gamma, beta, *, eps=1e-3, bf16_matmul=None):
    """x_nchw: (N, Cin, H, W)  w_oihw: (Cout, Cin, 1, 1)  gamma/beta: (Cout,)"""
    n, cin, h, w = x_nchw.shape
    cout = w_oihw.shape[0]
    p = n * h * w
    if bf16_matmul is None:
        bf16_matmul = _default_bf16_matmul()

    # NCHW -> (Cin, P). For N == 1 (the module's case) this is a pure reshape.
    x_cp = jnp.transpose(x_nchw, (1, 0, 2, 3)).reshape(cin, p)
    w_mat = w_oihw.reshape(cout, cin).astype(jnp.float32)        # (Cout, Cin)
    gamma2 = gamma.reshape(cout, 1).astype(jnp.float32)
    beta2 = beta.reshape(cout, 1).astype(jnp.float32)

    tp = _pick_tile_p(p)
    num_tiles = pl.cdiv(p, tp)
    p_pad = num_tiles * tp            # y cache padded so edge-tile stores stay in bounds
    ragged = (p_pad != p)

    kernel = functools.partial(
        conv1x1_bn_kernel, total_p=p, tile_p=tp, eps=float(eps),
        ragged=bool(ragged), bf16_matmul=bool(bf16_matmul))

    out_cp = pl.pallas_call(
        kernel,
        out_shape=jax.ShapeDtypeStruct((cout, p), jnp.float32),
        grid_spec=pltpu.PrefetchScalarGridSpec(
            num_scalar_prefetch=0,
            grid=(num_tiles,),
            in_specs=[
                # x: streamed P-tiles, double-buffered by the BlockSpec pipeline.
                pl.BlockSpec((cin, tp), lambda i: (0, i)),
                pl.BlockSpec((cout, cin), lambda i: (0, 0)),
                pl.BlockSpec((cout, 1), lambda i: (0, 0)),
                pl.BlockSpec((cout, 1), lambda i: (0, 0)),
            ],
            # Full (Cout, P) output block pinned across the grid: it doubles as the
            # normalized-result buffer and hits HBM exactly once, at grid end.
            out_specs=pl.BlockSpec((cout, p), lambda i: (0, 0)),
            scratch_shapes=[
                pltpu.VMEM((cout, p_pad), jnp.float32),   # cached un-normalized y
                pltpu.VMEM((cout, 1), jnp.float32),       # sum(y)
                pltpu.VMEM((cout, 1), jnp.float32),       # sum(y*y)
            ],
        ),
        compiler_params=pltpu.CompilerParams(
            # The single tile axis carries cross-step state (stats + resident output).
            dimension_semantics=("arbitrary",),
        ),
        cost_estimate=pl.CostEstimate(
            flops=2 * p * cin * cout,
            transcendentals=0,
            bytes_accessed=(p * cin + p * cout + cin * cout) * 4,
        ),
    )(x_cp, w_mat, gamma2, beta2)

    # (Cout, P) -> NCHW (free for N == 1).
    return jnp.transpose(out_cp.reshape(cout, n, h, w), (1, 0, 2, 3))


def reference(x_nchw, w_oihw, gamma, beta, eps=1e-3):
    # Plain-JAX reference of the same forward (training-mode BN, biased variance).
    n, cin, h, w = x_nchw.shape
    cout = w_oihw.shape[0]
    xf = jnp.transpose(x_nchw, (0, 2, 3, 1)).reshape(-1, cin)
    y = xf @ w_oihw.reshape(cout, cin).T
    mean = jnp.mean(y, axis=0, keepdims=True)
    var = jnp.mean((y - mean) ** 2, axis=0, keepdims=True)
    ynorm = (y - mean) / jnp.sqrt(var + eps) * gamma.reshape(1, -1) + beta.reshape(1, -1)
    return jnp.transpose(ynorm.reshape(n, h, w, cout), (0, 3, 1, 2))


if __name__ == "__main__":
    key = jax.random.PRNGKey(0)
    k_x, k_w, k_g, k_b = jax.random.split(key, 4)

    # Channels fixed by the module (192 -> 48). Spatial kept small but chosen so
    # P = 1600 is NOT a multiple of 128, exercising the ragged cdiv/masking path
    # that the real 56x56 input (P = 3136) also takes.
    N, CIN, COUT, H, W = 1, 192, 48, 40, 40

    x = jax.random.normal(k_x, (N, CIN, H, W), dtype=jnp.float32)
    w_conv = jax.random.normal(k_w, (COUT, CIN, 1, 1), dtype=jnp.float32) * 0.05
    gamma = 1.0 + 0.1 * jax.random.normal(k_g, (COUT,), dtype=jnp.float32)
    beta = 0.1 * jax.random.normal(k_b, (COUT,), dtype=jnp.float32)

    bf16 = _default_bf16_matmul()
    out = conv1x1_bn(x, w_conv, gamma, beta)
    jax.block_until_ready(out)

    ref = reference(x, w_conv, gamma, beta)
    assert out.shape == (N, COUT, H, W)
    tol = 3e-2 if bf16 else 5e-4
    err = float(jnp.max(jnp.abs(out - ref)))
    assert jnp.allclose(out, ref, atol=tol, rtol=tol), err

    print("KERNEL_OK")
</pallas_src>

<mosaic_0001>
module attributes {stable_mosaic.version = 11 : i64} {
  func.func @conv1x1_bn_kernel(%arg0: i32, %arg1: memref<192x1024xf32, #tpu.memory_space<vmem>>, %arg2: memref<48x192xf32, #tpu.memory_space<vmem>>, %arg3: memref<48x1xf32, #tpu.memory_space<vmem>>, %arg4: memref<48x1xf32, #tpu.memory_space<vmem>>, %arg5: memref<48x1600xf32, #tpu.memory_space<vmem>>, %arg6: memref<48x2048xf32, #tpu.memory_space<vmem>>, %arg7: memref<48x1xf32, #tpu.memory_space<vmem>>, %arg8: memref<48x1xf32, #tpu.memory_space<vmem>>) attributes {dimension_semantics = [#tpu.dimension_semantics<arbitrary>], iteration_bounds = array<i64: 2>, scalar_prefetch = 0 : i64, scratch_operands = 3 : i64, tpu.core_type = #tpu.core_type<tc>, window_params = [{transform_indices = @transform_0, window_bounds = array<i64: 192, 1024>}, {pipeline_mode = #tpu.pipeline_mode<synchronous>, transform_indices = @transform_1, window_bounds = array<i64: 48, 192>}, {pipeline_mode = #tpu.pipeline_mode<synchronous>, transform_indices = @transform_2, window_bounds = array<i64: 48, 1>}, {pipeline_mode = #tpu.pipeline_mode<synchronous>, transform_indices = @transform_3, window_bounds = array<i64: 48, 1>}, {pipeline_mode = #tpu.pipeline_mode<synchronous>, transform_indices = @transform_4, window_bounds = array<i64: 48, 1600>}]} {
    %c0_i32 = arith.constant 0 : i32
    %0 = arith.cmpi eq, %arg0, %c0_i32 : i32
    %1 = arith.extui %0 : i1 to i32
    %c0_i32_0 = arith.constant 0 : i32
    %2 = arith.cmpi ne, %1, %c0_i32_0 : i32
    scf.if %2 {
      %cst_18 = arith.constant 0.000000e+00 : f32
      %32 = vector.broadcast %cst_18 : f32 to vector<48x1xf32>
      %c0_19 = arith.constant 0 : index
      %c0_20 = arith.constant 0 : index
      %33 = vector.load %arg7[%c0_19, %c0_20] : memref<48x1xf32, #tpu.memory_space<vmem>>, vector<48x1xf32>
      tpu.vector_store %arg7[%c0_19, %c0_20], %32 {strides = array<i32>} : memref<48x1xf32, #tpu.memory_space<vmem>>, vector<48x1xf32>,
      %cst_21 = arith.constant 0.000000e+00 : f32
      %34 = vector.broadcast %cst_21 : f32 to vector<48x1xf32>
      %c0_22 = arith.constant 0 : index
      %c0_23 = arith.constant 0 : index
      %35 = vector.load %arg8[%c0_22, %c0_23] : memref<48x1xf32, #tpu.memory_space<vmem>>, vector<48x1xf32>
      tpu.vector_store %arg8[%c0_22, %c0_23], %34 {strides = array<i32>} : memref<48x1xf32, #tpu.memory_space<vmem>>, vector<48x1xf32>,
    } else {
    }
    %c0 = arith.constant 0 : index
    %c0_1 = arith.constant 0 : index
    %3 = vector.load %arg1[%c0, %c0_1] : memref<192x1024xf32, #tpu.memory_space<vmem>>, vector<192x1024xf32>
    %c0_2 = arith.constant 0 : index
    %c0_3 = arith.constant 0 : index
    %4 = vector.load %arg2[%c0_2, %c0_3] : memref<48x192xf32, #tpu.memory_space<vmem>>, vector<48x192xf32>
    %cst = arith.constant dense<0.000000e+00> : vector<48x1024xf32>
    %5 = tpu.matmul %4, %3, %cst {dimension_numbers = #tpu.dot_dimension_numbers<[1], [0], [0], [1], [0, 0, 1, 1], [], []>} : vector<48x192xf32>, vector<192x1024xf32>, vector<48x1024xf32> -> vector<48x1024xf32>
    %6 = tpu.iota {dimensions = array<i32: 1>} : vector<48x1024xi32>
    %c1024_i32 = arith.constant 1024 : i32
    %7 = arith.muli %arg0, %c1024_i32 : i32
    %8 = vector.broadcast %7 : i32 to vector<48x1024xi32>
    %9 = arith.addi %8, %6 : vector<48x1024xi32>
    %c1600_i32 = arith.constant 1600 : i32
    %10 = vector.broadcast %c1600_i32 : i32 to vector<48x1024xi32>
    %11 = arith.cmpi slt, %9, %10 : vector<48x1024xi32>
    %cst_4 = arith.constant 0.000000e+00 : f32
    %12 = vector.broadcast %cst_4 : f32 to vector<48x1024xf32>
    %13 = arith.select %11, %5, %12 : vector<48x1024xi1>, vector<48x1024xf32>
    %c1024_i32_5 = arith.constant 1024 : i32
    %14 = arith.muli %arg0, %c1024_i32_5 : i32
    %15 = tpu.assume_multiple %14, 1024 : i32
    %c0_6 = arith.constant 0 : index
    %16 = arith.index_cast %15 : i32 to index
    %17 = vector.load %arg6[%c0_6, %16] : memref<48x2048xf32, #tpu.memory_space<vmem>>, vector<48x1024xf32>
    tpu.vector_store %arg6[%c0_6, %16], %13 {strides = array<i32>} : memref<48x2048xf32, #tpu.memory_space<vmem>>, vector<48x1024xf32>,
    %c0_7 = arith.constant 0 : index
    %c0_8 = arith.constant 0 : index
    %18 = vector.load %arg7[%c0_7, %c0_8] : memref<48x1xf32, #tpu.memory_space<vmem>>, vector<48x1xf32>
    %cst_9 = arith.constant dense<0.000000e+00> : vector<48xf32>
    %19 = vector.multi_reduction <add>, %13, %cst_9 [1] : vector<48x1024xf32> to vector<48xf32>
    %20 = vector.shape_cast %19 : vector<48xf32> to vector<48x1xf32>
    %21 = arith.addf %18, %20 : vector<48x1xf32>
    %c0_10 = arith.constant 0 : index
    %c0_11 = arith.constant 0 : index
    %22 = vector.load %arg7[%c0_10, %c0_11] : memref<48x1xf32, #tpu.memory_space<vmem>>, vector<48x1xf32>
    tpu.vector_store %arg7[%c0_10, %c0_11], %21 {strides = array<i32>} : memref<48x1xf32, #tpu.memory_space<vmem>>, vector<48x1xf32>,
    %c0_12 = arith.constant 0 : index
    %c0_13 = arith.constant 0 : index
    %23 = vector.load %arg8[%c0_12, %c0_13] : memref<48x1xf32, #tpu.memory_space<vmem>>, vector<48x1xf32>
    %24 = arith.mulf %13, %13 : vector<48x1024xf32>
    %cst_14 = arith.constant dense<0.000000e+00> : vector<48xf32>
    %25 = vector.multi_reduction <add>, %24, %cst_14 [1] : vector<48x1024xf32> to vector<48xf32>
    %26 = vector.shape_cast %25 : vector<48xf32> to vector<48x1xf32>
    %27 = arith.addf %23, %26 : vector<48x1xf32>
    %c0_15 = arith.constant 0 : index
    %c0_16 = arith.constant 0 : index
    %28 = vector.load %arg8[%c0_15, %c0_16] : memref<48x1xf32, #tpu.memory_space<vmem>>, vector<48x1xf32>
    tpu.vector_store %arg8[%c0_15, %c0_16], %27 {strides = array<i32>} : memref<48x1xf32, #tpu.memory_space<vmem>>, vector<48x1xf32>,
    %c1_i32 = arith.constant 1 : i32
    %29 = arith.cmpi eq, %arg0, %c1_i32 : i32
    %30 = arith.extui %29 : i1 to i32
    %c0_i32_17 = arith.constant 0 : i32
    %31 = arith.cmpi ne, %30, %c0_i32_17 : i32
    scf.if %31 {
      %c0_18 = arith.constant 0 : index
      %c0_19 = arith.constant 0 : index
      %32 = vector.load %arg7[%c0_18, %c0_19] : memref<48x1xf32, #tpu.memory_space<vmem>>, vector<48x1xf32>
      %cst_20 = arith.constant 6.250000e-04 : f32
      %33 = vector.broadcast %cst_20 : f32 to vector<48x1xf32>
      %34 = arith.mulf %32, %33 : vector<48x1xf32>
      %c0_21 = arith.constant 0 : index
      %c0_22 = arith.constant 0 : index
      %35 = vector.load %arg8[%c0_21, %c0_22] : memref<48x1xf32, #tpu.memory_space<vmem>>, vector<48x1xf32>
      %cst_23 = arith.constant 6.250000e-04 : f32
      %36 = vector.broadcast %cst_23 : f32 to vector<48x1xf32>
      %37 = arith.mulf %35, %36 : vector<48x1xf32>
      %38 = arith.mulf %34, %34 : vector<48x1xf32>
      %39 = arith.subf %37, %38 : vector<48x1xf32>
      %cst_24 = arith.constant 0.000000e+00 : f32
      %40 = vector.broadcast %cst_24 : f32 to vector<48x1xf32>
      %41 = arith.maximumf %39, %40 : vector<48x1xf32>
      %c0_25 = arith.constant 0 : index
      %c0_26 = arith.constant 0 : index
      %42 = vector.load %arg3[%c0_25, %c0_26] : memref<48x1xf32, #tpu.memory_space<vmem>>, vector<48x1xf32>
      %cst_27 = arith.constant 1.000000e-03 : f32
      %43 = vector.broadcast %cst_27 : f32 to vector<48x1xf32>
      %44 = arith.addf %41, %43 : vector<48x1xf32>
      %45 = math.rsqrt %44 : vector<48x1xf32>
      %46 = arith.mulf %42, %45 : vector<48x1xf32>
      %c0_28 = arith.constant 0 : index
      %c0_29 = arith.constant 0 : index
      %47 = vector.load %arg4[%c0_28, %c0_29] : memref<48x1xf32, #tpu.memory_space<vmem>>, vector<48x1xf32>
      %48 = arith.mulf %34, %46 : vector<48x1xf32>
      %49 = arith.subf %47, %48 : vector<48x1xf32>
      %c0_30 = arith.constant 0 : index
      %c0_31 = arith.constant 0 : index
      %50 = vector.load %arg6[%c0_30, %c0_31] : memref<48x2048xf32, #tpu.memory_space<vmem>>, vector<48x1600xf32>
      %51 = vector.broadcast %46 : vector<48x1xf32> to vector<48x1600xf32>
      %52 = arith.mulf %50, %51 : vector<48x1600xf32>
      %53 = vector.broadcast %49 : vector<48x1xf32> to vector<48x1600xf32>
      %54 = arith.addf %52, %53 : vector<48x1600xf32>
      %c0_32 = arith.constant 0 : index
      %c0_33 = arith.constant 0 : index
      %55 = vector.load %arg5[%c0_32, %c0_33] : memref<48x1600xf32, #tpu.memory_space<vmem>>, vector<48x1600xf32>
      tpu.vector_store %arg5[%c0_32, %c0_33], %54 {strides = array<i32>} : memref<48x1600xf32, #tpu.memory_space<vmem>>, vector<48x1600xf32>,
    } else {
    }
    return
  }
  func.func @transform_0(%arg0: i32) -> (i32, i32) {
    %c0_i32 = arith.constant 0 : i32
    %c0_i32_0 = arith.constant 0 : i32
    return %c0_i32, %arg0 : i32, i32
  }
  func.func @transform_1(%arg0: i32) -> (i32, i32) {
    %c0_i32 = arith.constant 0 : i32
    %c0_i32_0 = arith.constant 0 : i32
    %c0_i32_1 = arith.constant 0 : i32
    return %c0_i32, %c0_i32_0 : i32, i32
  }
  func.func @transform_2(%arg0: i32) -> (i32, i32) {
    %c0_i32 = arith.constant 0 : i32
    %c0_i32_0 = arith.constant 0 : i32
    %c0_i32_1 = arith.constant 0 : i32
    return %c0_i32, %c0_i32_0 : i32, i32
  }
  func.func @transform_3(%arg0: i32) -> (i32, i32) {
    %c0_i32 = arith.constant 0 : i32
    %c0_i32_0 = arith.constant 0 : i32
    %c0_i32_1 = arith.constant 0 : i32
    return %c0_i32, %c0_i32_0 : i32, i32
  }
  func.func @transform_4(%arg0: i32) -> (i32, i32) {
    %c0_i32 = arith.constant 0 : i32
    %c0_i32_0 = arith.constant 0 : i32
    %c0_i32_1 = arith.constant 0 : i32
    return %c0_i32, %c0_i32_0 : i32, i32
  }
}

</mosaic_0001>

<bundles_post_ra>
// kernel: tpu_custom_call.1
= control target key start
LH: loop header
LB: loop body
LE: loop exit
PB: predicated region body
PF: predicated region fallthrough
CT: control target
= control target key end

     0   :  { %9 = vsyncpa [#allocation6], 0  ;;  %s3120_s0 = inlined_call_operand.hbm [shape: f32[192,1600], index: 0, kind: input, shape index: {}]   ;;  %s3121_s1 = inlined_call_operand.hbm [shape: f32[48,192], index: 1, kind: input, shape index: {}]   ;;  %s3122_s2 = inlined_call_operand.vmem [shape: f32[48,1], index: 2, kind: input, shape index: {}]   ;;  %s3123_s3 = inlined_call_operand.vmem [shape: f32[48,1], index: 3, kind: input, shape index: {}]   ;;  %s3124_s4 = inlined_call_operand.hbm [shape: f32[48,1600], index: 4, kind: output, shape index: {}]  }
   0x1   :  { %11 = vsyncpa [#allocation6 + $0x1], 0 }
   0x2   :  { %12 = vsyncpa [#allocation9], 0 }
   0x3   :  { %13 = vsyncpa [#allocation7], 0  ;;  %s2200_s15 = smov 0   ;;  %s2202_s16 = smov 0  }
   0x4   :  { %s2204_s17 = smov 0   ;;  %s2206_s18 = smov 0  }
   0x5 LB: > { %s2219_s19 = sadd.s32 4294967295, %s2162_s18   ;;  %s2222_s20 = sadd.s32 1, %s2162_s18   ;;  %s2162_s18 = sphi %s2206_s18, %s3165_s18   ;;  %s2158_s17 = sphi %s2204_s17, %s3164_s17   ;;  %s2154_s16 = sphi %s2202_s16, %s3163_s16   ;;  %s2150_s15 = sphi %s2200_s15, %s3162_s15  }
   0x6   : > { %s23_s21 = ssub.s32 %s2162_s18, %s2222_s20  ;;  %s26_s22 = sadd.s32 1, %s2158_s17 }
   0x7   : > { %p24_p0 = scmp.eq.s32.totalorder %s23_s21, 0  ;;  %p33_p1 = scmp.ne.s32.totalorder %s2158_s17, %s2154_s16 }
   0x8   : > { %p34_p2 = scmp.eq.s32.totalorder %s2162_s18, 0  ;;  %p39_p3 = scmp.ne.s32.totalorder %s2154_s16, %s2150_s15 }
   0x9   : > { %s2232_s23 = scalar_select %p24_p0, %s2158_s17, %s26_s22  }
   0xa   : > { %p2234_p4 = por %p34_p2, %p33_p1  ;;  %p3125_p5 = scmp.eq.s32.totalorder %s2219_s19, 0 }
   0xb   : > { %p1727_p6 = scmp.ge.s32.totalorder %s2162_s18, 1  ;;  %p134_p7 = scmp.lt.s32.totalorder %s2162_s18, 3 }
   0xc   : > { %s3130_s24 = scalar_select %p2234_p4, 1, 0 }
   0xd   : > { %p2243_p8 = por %p3125_p5, %p39_p3  ;;  %p2248_p10 = pnand %p1727_p6, %p134_p7 }
   0xe   : > { %s2164_s27 = smov [#allocation8]   ;;  %s2038_s6 = scalar_lea.hbm %s3121_s1, 1536 }
   0xf   : > { %s3131_s25 = scalar_select %p2243_p8, 1, 0 }
  0x10   : > { %s3132_s26 = scalar_select %p2248_p10, 1, 0 }
  0x11   : > { %s146_s28 = sshll.u32 %s2164_s27, 4  ;;  %p1974_p11 = pneg %p2248_p10  ;;  %s147_s28 = int_to_ptr.vmem [resolvable:$true] %s146_s28 }
  0x12   : > { %p2039_p13 = scmp.ne.s32.totalorder %s3121_s1, %s2038_s6  ;;  %p2045_p3 = scmp.lt.u32.totalorder %s2038_s6, %s3121_s1 }
  0x13   : > { %p2256_p12 = pnand %p1974_p11, %p3125_p5 }
  0x15   : > { %p2040_p0 = pneg %p2256_p12 }
  0x17   : > { %p2041_p1 = pnand %p2040_p0, %p2039_p13 }
  0x19   : > { %p2042_p2 = pneg %p2041_p1 }
  0x1b   : > { %p2047_p6 = pnand %p2045_p3, %p2042_p2 }
  0x1d   : > { %2050 = shalt.err (!%p2047_p6)
}
  0x1e   : > { %s2051_s11 = scalar_lea.vmem %s147_s28, 1536  ;;  %p2059_p5 = scmp.lt.s32.totalorder %s147_s28, %s147_s28 }
  0x1f   : > { %p2052_p7 = scmp.ne.s32.totalorder %s147_s28, %s2051_s11  ;;  %p2060_p8 = scmp.lt.s32.totalorder %s2051_s11, %s2051_s11 }
  0x21   : > { %p2054_p11 = pnand %p2052_p7, %p2040_p0  ;;  %p2061_p10 = por %p2060_p8, %p2059_p5 }
  0x23   : > { %p2055_p9 = pneg %p2054_p11 }
  0x25   : > { %p2062_p4 = pnand %p2061_p10, %p2055_p9 }
  0x27   : > { %2065 = shalt.err (!%p2062_p4)
}
  0x28   : > { %s2165_s12 = smov 256   ;;  %s2166_s13 = smov 16  }
  0x29   : > { %1977 = dma.hbm_to_vmem [thread:$0]  (!%p2256_p12), %s3121_s1, 1536, %s147_s28, [#allocation9], %s2165_s12, %s2165_s12, %s2166_s13  }
  0x2a   : > { %p1729_p13 = scmp.ge.s32.totalorder %s2162_s18, 2 }
  0x2b   : > { %p3134_p1 = scmp.ne.s32.totalorder (!%p1729_p13), %s3130_s24, 0 }
  0x2c   : > { %162 = sbr.rel (%p1729_p13) target bundleno = 87 (0x57), region = 28 }
  0x33   : > { %165 = sbr.rel (!%p3134_p1) target bundleno = 87 (0x57), region = 32  ;;  %s166_s21 = sand.u32 (%p3134_p1), 1, %s2158_s17  }
  0x34   : > { %s1730_s22 = sshll.u32 (%p3134_p1), %s2162_s18, 3  ;;  %s1963_s27 = smul.u32 (%p3134_p1), 1536, %s166_s21 }
  0x35   : > { %s172_s30 = ssub.s32 (%p3134_p1), 13, %s1730_s22  ;;  %s2287_s5 = scalar_lea.sflag (%p3134_p1), [#allocation6], %s166_s21 }
  0x36   : > { %p173_p4 = scmp.lt.s32.totalorder (%p3134_p1), %s172_s30, 8  ;;  %s170_s6 = scalar_lea.vmem (%p3134_p1), [#allocation5], %s1963_s27 }
  0x3a   : > { %s3167_s30 = smov (!%p173_p4, %s172_s30), 8 }
  0x3b   : > { %s2284_s29 = smul.u32 3072, %s3167_s30 }
  0x3d   : > { %s177_s28 = ssub.s32 24576, %s2284_s29 }
  0x3e   : > { %178 = vsyncadd %s2287_s5, %s177_s28  ;;  %p1731_p5 = scmp.ne.s32.totalorder %s2284_s29, 0  ;;  %s1770_s24 = sshll.u32 %s2162_s18, 10 }
  0x3f   : > { %s2295_s9 = scalar_lea.hbm %s3120_s0, %s1770_s24  ;;  %s1733_s10 = sshll.u32 %s3167_s30, 3 }
  0x40   : > { %s184_s11 = sshll.u32 %s170_s6, 4  ;;  %s2066_s12 = scalar_lea.hbm %s2295_s9, %s2284_s29  ;;  %s2298_s11 = int_to_ptr.vmem [resolvable:$true] %s184_s11 }
  0x41   : > { %p2067_p8 = scmp.ne.s32.totalorder %s2295_s9, %s2066_s12  ;;  %s2070_s14 = scalar_lea.hbm %s3120_s0, 39936 }
  0x42   : > { %p2071_p12 = scmp.lt.u32.totalorder %s2295_s9, %s3120_s0  ;;  %p2072_p0 = scmp.lt.u32.totalorder %s2070_s14, %s2066_s12 }
  0x43   : > { %p2068_p9 = pnand %p2067_p8, %p1731_p5  ;;  %p2074_p3 = scmp.lt.u32.totalorder %s2066_s12, %s2295_s9 }
  0x44   : > { %p2073_p2 = por %p2072_p0, %p2071_p12 }
  0x45   : > { %p2069_p10 = pneg %p2068_p9 }
  0x46   : > { %p2075_p6 = por %p2074_p3, %p2073_p2 }
  0x48   : > { %p2076_p7 = pnand %p2075_p6, %p2069_p10 }
  0x4a   : > { %2079 = shalt.err (!%p2076_p7)
}
  0x4b   : > { %s2080_s22 = scalar_lea.vmem %s2298_s11, %s2284_s29  ;;  %s2167_s27 = smov [#allocation5]  }
  0x4c   : > { %p2081_p11 = scmp.ne.s32.totalorder %s2298_s11, %s2080_s22  ;;  %s2084_s28 = sshll.u32 %s2167_s27, 4  ;;  %s2085_s28 = int_to_ptr.vmem [resolvable:$false] %s2084_s28 }
  0x4d   : > { %s2086_s6 = scalar_lea.vmem %s2085_s28, 49152  ;;  %p2087_p4 = scmp.lt.s32.totalorder %s2298_s11, %s2085_s28 }
  0x4e   : > { %p2082_p13 = pnand %p2081_p11, %p1731_p5  ;;  %p2088_p8 = scmp.lt.s32.totalorder %s2086_s6, %s2080_s22 }
  0x50   : > { %p2083_p1 = pneg %p2082_p13  ;;  %p2089_p9 = por %p2088_p8, %p2087_p4 }
  0x52   : > { %p2090_p12 = pnand %p2089_p9, %p2083_p1 }
  0x54   : > { %2093 = shalt.err (!%p2090_p12)
}
  0x55   : > { %s2168_s24 = smov 1664   ;;  %s2169_s7 = smov 1024  }
  0x56   : > { %190 = dma.hbm_to_vmem [thread:$0]  (%p1731_p5), %s2295_s9, %s2284_s29, %s2298_s11, %s2287_s5, %s2168_s24, %s2169_s7, %s1733_s10  }
  0x57 PF: > { %p3135_p10 = scmp.ne.s32.totalorder %s3132_s26, 0 }
  0x58   : > { %s198_s8 = sand.u32 (!%p3135_p10), 1, %s2154_s16   ;;  %p3136_p0 = scmp.ne.s32.totalorder (!%p3135_p10), %s3131_s25, 0 }
  0x59   : > { %196 = sbr.rel (%p3135_p10) target bundleno = 836 (0x344), region = 36  ;;  %s199_s13 = scalar_lea.sflag (!%p3135_p10), [#allocation6], %s198_s8 }
  0x5a   : > { %s1964_s12 = smul.u32 (!%p3135_p10), 1536, %s198_s8 }
  0x5c   : > { %s2330_s18 = scalar_lea.vmem (!%p3135_p10), [#allocation5], %s1964_s12 }
  0x60   : > { %2137 = dma.done.wait (%p3136_p0), %s199_s13, 24576  }
  0x61   : > { %2139 = vsyncadd (%p3136_p0), %s199_s13, 4294942720  ;;  %p3137_p2 = scmp.eq.s32.totalorder %s2219_s19, 0 }
  0x63   : > { %2141 = dma.done.wait (%p3137_p2), [#allocation9], 1536   ;;  %p3138_p5 = pmov %p3137_p2 }
  0x64   : > { %p3139_p3 = scmp.ne.s32.totalorder %s2219_s19, 0 }
  0x65   : > { %2143 = vsyncadd (%p3138_p5), [#allocation9], 4294965760  ;;  %vm235_vm0 = vcmask (!%p3139_p3), 7168   ;;  %v2170_v0 = vmov (!%p3139_p3), 0.0  }
  0x66   : > { %234 = sbr.rel (%p3139_p3) target bundleno = 109 (0x6d), region = 48  ;;  %236 = vst.msk [vmem:[#allocation3] sm:$0xff] (!%p3139_p3), %vm235_vm0, %v2170_v0  ;;  %237 = vst.msk [vmem:[#allocation3 + $0x8] sm:$0xff] (!%p3139_p3), %vm235_vm0, %v2170_v0 }
  0x67   : > { %238 = vst.msk [vmem:[#allocation3 + $0x10] sm:$0xff] (!%p3139_p3), %vm235_vm0, %v2170_v0  ;;  %239 = vst.msk [vmem:[#allocation3 + $0x18] sm:$0xff] (!%p3139_p3), %vm235_vm0, %v2170_v0 }
  0x68   : > { %240 = vst.msk [vmem:[#allocation3 + $0x20] sm:$0xff] (!%p3139_p3), %vm235_vm0, %v2170_v0  ;;  %241 = vst.msk [vmem:[#allocation3 + $0x28] sm:$0xff] (!%p3139_p3), %vm235_vm0, %v2170_v0 }
  0x69   : > { %242 = vst.msk [vmem:[#allocation4] sm:$0xff] (!%p3139_p3), %vm235_vm0, %v2170_v0  ;;  %243 = vst.msk [vmem:[#allocation4 + $0x8] sm:$0xff] (!%p3139_p3), %vm235_vm0, %v2170_v0 }
  0x6a   : > { %244 = vst.msk [vmem:[#allocation4 + $0x10] sm:$0xff] (!%p3139_p3), %vm235_vm0, %v2170_v0  ;;  %245 = vst.msk [vmem:[#allocation4 + $0x18] sm:$0xff] (!%p3139_p3), %vm235_vm0, %v2170_v0 }
  0x6b   : > { %246 = vst.msk [vmem:[#allocation4 + $0x20] sm:$0xff] (!%p3139_p3), %vm235_vm0, %v2170_v0  ;;  %247 = vst.msk [vmem:[#allocation4 + $0x28] sm:$0xff] (!%p3139_p3), %vm235_vm0, %v2170_v0 }
  0x6d PF: > { %v249_v1 = vld [vmem:[%s2330_s18 + $0x8] sm:$0xff]  ;;  %v248_v3 = vld [vmem:[%s2330_s18] sm:$0xff]  ;;  %v251_v6 = vld [vmem:[%s2330_s18 + $0x18] sm:$0xff]  ;;  %vm452_vm1 = vcmask 523264   ;;  %s1763_s25 = sshll.u32 %s2219_s19, 10  ;;  %vm1068_vm10 = vcmask 7168  }
  0x6e   : > { %v257_v2 = vld [vmem:[%s2330_s18 + $0x48] sm:$0xff]  ;;  %v256_v5 = vld [vmem:[%s2330_s18 + $0x40] sm:$0xff]  ;;  %v259_v7 = vld [vmem:[%s2330_s18 + $0x58] sm:$0xff]  ;;  %s950_s26 = sshra.s32 %s1763_s25, 7  ;;  %p1765_p6 = scmp.ne.s32.totalorder %s2219_s19, 1 }
  0x6f   : > { %v1771_v4 = vpack.c.bf16 %v257_v2, %v249_v1  ;;  %v1773_v8 = vpack.c.bf16 %v256_v5, %v248_v3  ;;  %v1819_v9 = vpack.c.bf16 %v259_v7, %v251_v6  ;;  %v265_v10 = vld [vmem:[%s2330_s18 + $0x88] sm:$0xff]  ;;  %v250_v12 = vld [vmem:[%s2330_s18 + $0x10] sm:$0xff]  ;;  %v264_v15 = vld [vmem:[%s2330_s18 + $0x80] sm:$0xff]  ;;  %s1764_s30 = sshll.u32 %s950_s26, 3 }
  0x70   : > { %v273_v11 = vld [vmem:[%s2330_s18 + $0xc8] sm:$0xff]  ;;  %v258_v14 = vld [vmem:[%s2330_s18 + $0x50] sm:$0xff]  ;;  %v272_v16 = vld [vmem:[%s2330_s18 + $0xc0] sm:$0xff]  ;;  %s2657_s29 = scalar_lea.vmem [#allocation2], %s1764_s30 }
  0x71   : > { %1772 = vmatprep.subr.bf16.mxu0 %v1771_v4  ;;  %v1775_v13 = vpack.c.bf16 %v273_v11, %v265_v10  ;;  %1820 = vmatprep.subr.bf16.mxu1 %v1819_v9  ;;  %v1821_v17 = vpack.c.bf16 %v258_v14, %v250_v12  ;;  %v1777_v18 = vpack.c.bf16 %v272_v16, %v264_v15  ;;  %v267_v19 = vld [vmem:[%s2330_s18 + $0x98] sm:$0xff]  ;;  %v281_v21 = vld [vmem:[%s2330_s18 + $0x108] sm:$0xff]  ;;  %v266_v24 = vld [vmem:[%s2330_s18 + $0x90] sm:$0xff] }
  0x72   : > { %1774 = vmatpush1.bf16.msra.mxu0 %v1773_v8  ;;  %v275_v20 = vld [vmem:[%s2330_s18 + $0xd8] sm:$0xff]  ;;  %v289_v23 = vld [vmem:[%s2330_s18 + $0x148] sm:$0xff]  ;;  %v274_v25 = vld [vmem:[%s2330_s18 + $0xd0] sm:$0xff] }
  0x73   : > { %1776 = vmatprep.subr.bf16.mxu0 %v1775_v13  ;;  %v1823_v22 = vpack.c.bf16 %v275_v20, %v267_v19  ;;  %1822 = vmatpush1.bf16.msra.mxu1 %v1821_v17  ;;  %v1779_v26 = vpack.c.bf16 %v289_v23, %v281_v21  ;;  %v1825_v27 = vpack.c.bf16 %v274_v25, %v266_v24  ;;  %v280_v28 = vld [vmem:[%s2330_s18 + $0x100] sm:$0xff]  ;;  %v283_v30 = vld [vmem:[%s2330_s18 + $0x118] sm:$0xff]  ;;  %v297_v32 = vld [vmem:[%s2330_s18 + $0x188] sm:$0xff] }
  0x74   : > { %v288_v29 = vld [vmem:[%s2330_s18 + $0x140] sm:$0xff]  ;;  %v291_v31 = vld [vmem:[%s2330_s18 + $0x158] sm:$0xff]  ;;  %v305_v33 = vld [vmem:[%s2330_s18 + $0x1c8] sm:$0xff] }
  0x75   : > { %1824 = vmatprep.subr.bf16.mxu1 %v1823_v22  ;;  %v1781_v34 = vpack.c.bf16 %v288_v29, %v280_v28  ;;  %v1827_v35 = vpack.c.bf16 %v291_v31, %v283_v30  ;;  %v282_v36 = vld [vmem:[%s2330_s18 + $0x110] sm:$0xff]  ;;  %v296_v38 = vld [vmem:[%s2330_s18 + $0x180] sm:$0xff]  ;;  %v1783_v39 = vpack.c.bf16 %v305_v33, %v297_v32  ;;  %v299_v41 = vld [vmem:[%s2330_s18 + $0x198] sm:$0xff] }
  0x76   : > { %1778 = vmatpush1.bf16.msra.mxu0 %v1777_v18  ;;  %v290_v37 = vld [vmem:[%s2330_s18 + $0x150] sm:$0xff]  ;;  %v304_v40 = vld [vmem:[%s2330_s18 + $0x1c0] sm:$0xff]  ;;  %v307_v42 = vld [vmem:[%s2330_s18 + $0x1d8] sm:$0xff] }
  0x77   : > { %1780 = vmatprep.subr.bf16.mxu0 %v1779_v26  ;;  %1826 = vmatpush1.bf16.msra.mxu1 %v1825_v27  ;;  %v1829_v43 = vpack.c.bf16 %v290_v37, %v282_v36  ;;  %v313_v44 = vld [vmem:[%s2330_s18 + $0x208] sm:$0xff]  ;;  %v1831_v46 = vpack.c.bf16 %v307_v42, %v299_v41  ;;  %v298_v47 = vld [vmem:[%s2330_s18 + $0x190] sm:$0xff]  ;;  %v1785_v49 = vpack.c.bf16 %v304_v40, %v296_v38  ;;  %v315_v50 = vld [vmem:[%s2330_s18 + $0x218] sm:$0xff] }
  0x78   : > { %v321_v45 = vld [vmem:[%s2330_s18 + $0x248] sm:$0xff]  ;;  %1828 = vmatprep.subr.bf16.mxu1 %v1827_v35  ;;  %v306_v48 = vld [vmem:[%s2330_s18 + $0x1d0] sm:$0xff]  ;;  %v323_v51 = vld [vmem:[%s2330_s18 + $0x258] sm:$0xff] }
  0x79   : > { %v1787_v52 = vpack.c.bf16 %v321_v45, %v313_v44  ;;  %v312_v53 = vld [vmem:[%s2330_s18 + $0x200] sm:$0xff]  ;;  %v1833_v55 = vpack.c.bf16 %v306_v48, %v298_v47  ;;  %v329_v56 = vld [vmem:[%s2330_s18 + $0x288] sm:$0xff]  ;;  %v1835_v58 = vpack.c.bf16 %v323_v51, %v315_v50  ;;  %v314_v59 = vld [vmem:[%s2330_s18 + $0x210] sm:$0xff] }
  0x7a   : > { %1782 = vmatpush1.bf16.msra.mxu0 %v1781_v34  ;;  %v320_v54 = vld [vmem:[%s2330_s18 + $0x240] sm:$0xff]  ;;  %v337_v57 = vld [vmem:[%s2330_s18 + $0x2c8] sm:$0xff]  ;;  %v322_v60 = vld [vmem:[%s2330_s18 + $0x250] sm:$0xff] }
  0x7b   : > { %1784 = vmatprep.subr.bf16.mxu0 %v1783_v39  ;;  %1830 = vmatpush1.bf16.msra.mxu1 %v1829_v43  ;;  %v1789_v61 = vpack.c.bf16 %v320_v54, %v312_v53  ;;  %v331_v62 = vld [vmem:[%s2330_s18 + $0x298] sm:$0xff]  ;;  %v1791_v0 = vpack.c.bf16 %v337_v57, %v329_v56  ;;  %v328_v1 = vld [vmem:[%s2330_s18 + $0x280] sm:$0xff]  ;;  %v1837_v3 = vpack.c.bf16 %v322_v60, %v314_v59  ;;  %v345_v4 = vld [vmem:[%s2330_s18 + $0x308] sm:$0xff] }
  0x7c   : > { %1832 = vmatprep.subr.bf16.mxu1 %v1831_v46  ;;  %v339_v63 = vld [vmem:[%s2330_s18 + $0x2d8] sm:$0xff]  ;;  %v336_v2 = vld [vmem:[%s2330_s18 + $0x2c0] sm:$0xff]  ;;  %v353_v5 = vld [vmem:[%s2330_s18 + $0x348] sm:$0xff] }
  0x7d   : > { %v1839_v6 = vpack.c.bf16 %v339_v63, %v331_v62  ;;  %v330_v7 = vld [vmem:[%s2330_s18 + $0x290] sm:$0xff]  ;;  %v1793_v9 = vpack.c.bf16 %v336_v2, %v328_v1  ;;  %v347_v10 = vld [vmem:[%s2330_s18 + $0x318] sm:$0xff]  ;;  %v1795_v12 = vpack.c.bf16 %v353_v5, %v345_v4  ;;  %v344_v13 = vld [vmem:[%s2330_s18 + $0x300] sm:$0xff] }
  0x7e   : > { %1786 = vmatpush1.bf16.msra.mxu0 %v1785_v49  ;;  %v338_v8 = vld [vmem:[%s2330_s18 + $0x2d0] sm:$0xff]  ;;  %v355_v11 = vld [vmem:[%s2330_s18 + $0x358] sm:$0xff]  ;;  %v352_v14 = vld [vmem:[%s2330_s18 + $0x340] sm:$0xff] }
  0x7f   : > { %1788 = vmatprep.subr.bf16.mxu0 %v1787_v52  ;;  %1834 = vmatpush1.bf16.msra.mxu1 %v1833_v55  ;;  %v1841_v15 = vpack.c.bf16 %v338_v8, %v330_v7  ;;  %v361_v16 = vld [vmem:[%s2330_s18 + $0x388] sm:$0xff]  ;;  %v1843_v18 = vpack.c.bf16 %v355_v11, %v347_v10  ;;  %v346_v19 = vld [vmem:[%s2330_s18 + $0x310] sm:$0xff]  ;;  %v1797_v21 = vpack.c.bf16 %v352_v14, %v344_v13  ;;  %v363_v22 = vld [vmem:[%s2330_s18 + $0x398] sm:$0xff] }
  0x80   : > { %1836 = vmatprep.subr.bf16.mxu1 %v1835_v58  ;;  %v369_v17 = vld [vmem:[%s2330_s18 + $0x3c8] sm:$0xff]  ;;  %v354_v20 = vld [vmem:[%s2330_s18 + $0x350] sm:$0xff]  ;;  %v371_v23 = vld [vmem:[%s2330_s18 + $0x3d8] sm:$0xff] }
  0x81   : > { %v1799_v24 = vpack.c.bf16 %v369_v17, %v361_v16  ;;  %v360_v25 = vld [vmem:[%s2330_s18 + $0x380] sm:$0xff]  ;;  %v1845_v27 = vpack.c.bf16 %v354_v20, %v346_v19  ;;  %v377_v28 = vld [vmem:[%s2330_s18 + $0x408] sm:$0xff]  ;;  %v1847_v30 = vpack.c.bf16 %v371_v23, %v363_v22  ;;  %v362_v31 = vld [vmem:[%s2330_s18 + $0x390] sm:$0xff] }
  0x82   : > { %1790 = vmatpush1.bf16.msra.mxu0 %v1789_v61  ;;  %v368_v26 = vld [vmem:[%s2330_s18 + $0x3c0] sm:$0xff]  ;;  %v385_v29 = vld [vmem:[%s2330_s18 + $0x448] sm:$0xff]  ;;  %v370_v32 = vld [vmem:[%s2330_s18 + $0x3d0] sm:$0xff] }
  0x83   : > { %1792 = vmatprep.subr.bf16.mxu0 %v1791_v0  ;;  %1838 = vmatpush1.bf16.msra.mxu1 %v1837_v3  ;;  %v1801_v33 = vpack.c.bf16 %v368_v26, %v360_v25  ;;  %v379_v34 = vld [vmem:[%s2330_s18 + $0x418] sm:$0xff]  ;;  %v1803_v36 = vpack.c.bf16 %v385_v29, %v377_v28  ;;  %v376_v37 = vld [vmem:[%s2330_s18 + $0x400] sm:$0xff]  ;;  %v1849_v39 = vpack.c.bf16 %v370_v32, %v362_v31  ;;  %v393_v40 = vld [vmem:[%s2330_s18 + $0x488] sm:$0xff] }
  0x84   : > { %1840 = vmatprep.subr.bf16.mxu1 %v1839_v6  ;;  %v387_v35 = vld [vmem:[%s2330_s18 + $0x458] sm:$0xff]  ;;  %v384_v38 = vld [vmem:[%s2330_s18 + $0x440] sm:$0xff]  ;;  %v401_v41 = vld [vmem:[%s2330_s18 + $0x4c8] sm:$0xff] }
  0x85   : > { %v2414_v42 = vld [vmem:[#allocation8 + $0x8] sm:$0xff]  ;;  %v1851_v43 = vpack.c.bf16 %v387_v35, %v379_v34  ;;  %v378_v44 = vld [vmem:[%s2330_s18 + $0x410] sm:$0xff]  ;;  %v1805_v46 = vpack.c.bf16 %v384_v38, %v376_v37  ;;  %v395_v47 = vld [vmem:[%s2330_s18 + $0x498] sm:$0xff]  ;;  %v1807_v49 = vpack.c.bf16 %v401_v41, %v393_v40 }
  0x86   : > { %1794 = vmatpush1.bf16.msra.mxu0 %v1793_v9  ;;  %v386_v45 = vld [vmem:[%s2330_s18 + $0x450] sm:$0xff]  ;;  %1739 = vmatprep.mubr.msk.f32.mxu0 %vm452_vm1, %v2414_v42  ;;  %v403_v48 = vld [vmem:[%s2330_s18 + $0x4d8] sm:$0xff]  ;;  %v392_v50 = vld [vmem:[%s2330_s18 + $0x480] sm:$0xff] }
  0x87   : > { %1796 = vmatprep.subr.bf16.mxu0 %v1795_v12  ;;  %1842 = vmatpush1.bf16.msra.mxu1 %v1841_v15  ;;  %v400_v51 = vld [vmem:[%s2330_s18 + $0x4c0] sm:$0xff]  ;;  %v1853_v52 = vpack.c.bf16 %v386_v45, %v378_v44  ;;  %v409_v53 = vld [vmem:[%s2330_s18 + $0x508] sm:$0xff]  ;;  %v1855_v55 = vpack.c.bf16 %v403_v48, %v395_v47  ;;  %v394_v56 = vld [vmem:[%s2330_s18 + $0x490] sm:$0xff] }
  0x88   : > { %1844 = vmatprep.subr.bf16.mxu1 %v1843_v18  ;;  %1745 = vmatprep.mubr.msk.f32.mxu1 %vm452_vm1, %v2414_v42  ;;  %v417_v54 = vld [vmem:[%s2330_s18 + $0x548] sm:$0xff]  ;;  %v402_v57 = vld [vmem:[%s2330_s18 + $0x4d0] sm:$0xff]  ;;  %v1809_v58 = vpack.c.bf16 %v400_v51, %v392_v50  ;;  %v411_v59 = vld [vmem:[%s2330_s18 + $0x518] sm:$0xff] }
  0x89   : > { %v419_v60 = vld [vmem:[%s2330_s18 + $0x558] sm:$0xff]  ;;  %v1811_v61 = vpack.c.bf16 %v417_v54, %v409_v53  ;;  %v408_v62 = vld [vmem:[%s2330_s18 + $0x500] sm:$0xff]  ;;  %v1857_v0 = vpack.c.bf16 %v402_v57, %v394_v56  ;;  %v425_v1 = vld [vmem:[%s2330_s18 + $0x588] sm:$0xff] }
  0x8a   : > { %1798 = vmatpush1.bf16.msra.mxu0 %v1797_v21  ;;  %v416_v63 = vld [vmem:[%s2330_s18 + $0x540] sm:$0xff]  ;;  %v433_v2 = vld [vmem:[%s2330_s18 + $0x5c8] sm:$0xff]  ;;  %v1859_v3 = vpack.c.bf16 %v419_v60, %v411_v59  ;;  %v410_v4 = vld [vmem:[%s2330_s18 + $0x510] sm:$0xff] }
  0x8b   : > { %1800 = vmatprep.subr.bf16.mxu0 %v1799_v24  ;;  %1846 = vmatpush1.bf16.msra.mxu1 %v1845_v27  ;;  %v418_v5 = vld [vmem:[%s2330_s18 + $0x550] sm:$0xff]  ;;  %v1813_v6 = vpack.c.bf16 %v416_v63, %v408_v62  ;;  %v427_v7 = vld [vmem:[%s2330_s18 + $0x598] sm:$0xff]  ;;  %v1815_v9 = vpack.c.bf16 %v433_v2, %v425_v1  ;;  %v424_v10 = vld [vmem:[%s2330_s18 + $0x580] sm:$0xff] }
  0x8c   : > { %1848 = vmatprep.subr.bf16.mxu1 %v1847_v30  ;;  %v435_v8 = vld [vmem:[%s2330_s18 + $0x5d8] sm:$0xff]  ;;  %v432_v11 = vld [vmem:[%s2330_s18 + $0x5c0] sm:$0xff]  ;;  %v1861_v12 = vpack.c.bf16 %v418_v5, %v410_v4  ;;  %v253_v13 = vld [vmem:[%s2330_s18 + $0x28] sm:$0xff] }
  0x8d   : > { %v261_v14 = vld [vmem:[%s2330_s18 + $0x68] sm:$0xff]  ;;  %v1863_v15 = vpack.c.bf16 %v435_v8, %v427_v7  ;;  %v426_v16 = vld [vmem:[%s2330_s18 + $0x590] sm:$0xff]  ;;  %v1817_v18 = vpack.c.bf16 %v432_v11, %v424_v10  ;;  %v255_v19 = vld [vmem:[%s2330_s18 + $0x38] sm:$0xff] }
  0x8e   : > { %1802 = vmatpush1.bf16.msra.mxu0 %v1801_v33  ;;  %v434_v17 = vld [vmem:[%s2330_s18 + $0x5d0] sm:$0xff]  ;;  %v263_v20 = vld [vmem:[%s2330_s18 + $0x78] sm:$0xff]  ;;  %v1867_v21 = vpack.c.bf16 %v261_v14, %v253_v13  ;;  %v252_v22 = vld [vmem:[%s2330_s18 + $0x20] sm:$0xff] }
  0x8f   : > { %1804 = vmatprep.subr.bf16.mxu0 %v1803_v36  ;;  %1850 = vmatpush1.bf16.msra.mxu1 %v1849_v39  ;;  %v260_v23 = vld [vmem:[%s2330_s18 + $0x60] sm:$0xff]  ;;  %v1865_v24 = vpack.c.bf16 %v434_v17, %v426_v16  ;;  %v269_v25 = vld [vmem:[%s2330_s18 + $0xa8] sm:$0xff]  ;;  %v1915_v27 = vpack.c.bf16 %v263_v20, %v255_v19  ;;  %v254_v28 = vld [vmem:[%s2330_s18 + $0x30] sm:$0xff] }
  0x90   : > { %1852 = vmatprep.subr.bf16.mxu1 %v1851_v43  ;;  %v277_v26 = vld [vmem:[%s2330_s18 + $0xe8] sm:$0xff]  ;;  %v262_v29 = vld [vmem:[%s2330_s18 + $0x70] sm:$0xff]  ;;  %v2454_v30 = vld [vmem:[#allocation8] sm:$0xff]  ;;  %v1869_v31 = vpack.c.bf16 %v260_v23, %v252_v22 }
  0x91   : > { %v271_v32 = vld [vmem:[%s2330_s18 + $0xb8] sm:$0xff]  ;;  %v1871_v34 = vpack.c.bf16 %v277_v26, %v269_v25  ;;  %v268_v35 = vld [vmem:[%s2330_s18 + $0xa0] sm:$0xff]  ;;  %v1917_v37 = vpack.c.bf16 %v262_v29, %v254_v28  ;;  %v285_v38 = vld [vmem:[%s2330_s18 + $0x128] sm:$0xff] }
  0x92   : > { %1806 = vmatpush1.bf16.msra.mxu0 %v1805_v46  ;;  %v279_v33 = vld [vmem:[%s2330_s18 + $0xf8] sm:$0xff]  ;;  %v276_v36 = vld [vmem:[%s2330_s18 + $0xe0] sm:$0xff]  ;;  %v293_v39 = vld [vmem:[%s2330_s18 + $0x168] sm:$0xff] }
  0x93   : > { %1808 = vmatprep.subr.bf16.mxu0 %v1807_v49  ;;  %1854 = vmatpush1.bf16.msra.mxu1 %v1853_v52  ;;  %v2462_v40 = vld [vmem:[#allocation8 + $0x18] sm:$0xff]  ;;  %v1919_v41 = vpack.c.bf16 %v279_v33, %v271_v32  ;;  %v270_v43 = vld [vmem:[%s2330_s18 + $0xb0] sm:$0xff]  ;;  %v1873_v45 = vpack.c.bf16 %v276_v36, %v268_v35  ;;  %v1875_v49 = vpack.c.bf16 %v293_v39, %v285_v38  ;;  %v284_v50 = vld [vmem:[%s2330_s18 + $0x120] sm:$0xff] }
  0x94   : > { %1856 = vmatprep.subr.bf16.mxu1 %v1855_v55  ;;  %v278_v44 = vld [vmem:[%s2330_s18 + $0xf0] sm:$0xff]  ;;  %v287_v46 = vld [vmem:[%s2330_s18 + $0x138] sm:$0xff]  ;;  %v292_v51 = vld [vmem:[%s2330_s18 + $0x160] sm:$0xff] }
  0x95   : > { %v295_v47 = vld [vmem:[%s2330_s18 + $0x178] sm:$0xff]  ;;  %v2471_v48 = vld [vmem:[#allocation8 + $0x10] sm:$0xff]  ;;  %v2476_v52 = vld [vmem:[#allocation8 + $0x28] sm:$0xff]  ;;  %v1921_v53 = vpack.c.bf16 %v278_v44, %v270_v43  ;;  %v1877_v59 = vpack.c.bf16 %v292_v51, %v284_v50 }
  0x96   : > { %1810 = vmatpush1.bf16.msra.mxu0 %v1809_v58  ;;  %v301_v54 = vld [vmem:[%s2330_s18 + $0x1a8] sm:$0xff]  ;;  %v1923_v56 = vpack.c.bf16 %v295_v47, %v287_v46  ;;  %v286_v57 = vld [vmem:[%s2330_s18 + $0x130] sm:$0xff]  ;;  %v303_v60 = vld [vmem:[%s2330_s18 + $0x1b8] sm:$0xff] }
  0x97   : > { %1812 = vmatprep.subr.bf16.mxu0 %v1811_v61  ;;  %1858 = vmatpush1.bf16.msra.mxu1 %v1857_v0  ;;  %v309_v55 = vld [vmem:[%s2330_s18 + $0x1e8] sm:$0xff]  ;;  %v294_v58 = vld [vmem:[%s2330_s18 + $0x170] sm:$0xff]  ;;  %v311_v61 = vld [vmem:[%s2330_s18 + $0x1f8] sm:$0xff] }
  0x98   : > { %1860 = vmatprep.subr.bf16.mxu1 %v1859_v3  ;;  %v2489_v62 = vld [vmem:[#allocation8 + $0x20] sm:$0xff]  ;;  %v1879_v63 = vpack.c.bf16 %v309_v55, %v301_v54  ;;  %v2494_v2 = vld [vmem:[#allocation8 + $0x38] sm:$0xff]  ;;  %v1925_v3 = vpack.c.bf16 %v294_v58, %v286_v57  ;;  %v317_v4 = vld [vmem:[%s2330_s18 + $0x228] sm:$0xff] }
  0x99   : > { %v300_v0 = vld [vmem:[%s2330_s18 + $0x1a0] sm:$0xff]  ;;  %v325_v5 = vld [vmem:[%s2330_s18 + $0x268] sm:$0xff]  ;;  %v302_v7 = vld [vmem:[%s2330_s18 + $0x1b0] sm:$0xff] }
  0x9a   : > { %1814 = vmatpush1.bf16.msra.mxu0 %v1813_v6  ;;  %v308_v1 = vld [vmem:[%s2330_s18 + $0x1e0] sm:$0xff]  ;;  %v1927_v6 = vpack.c.bf16 %v311_v61, %v303_v60  ;;  %v310_v8 = vld [vmem:[%s2330_s18 + $0x1f0] sm:$0xff]  ;;  %v319_v10 = vld [vmem:[%s2330_s18 + $0x238] sm:$0xff]  ;;  %v1883_v13 = vpack.c.bf16 %v325_v5, %v317_v4 }
  0x9b   : > { %1816 = vmatprep.subr.bf16.mxu0 %v1815_v9  ;;  %1862 = vmatpush1.bf16.msra.mxu1 %v1861_v12  ;;  %v1881_v9 = vpack.c.bf16 %v308_v1, %v300_v0  ;;  %v327_v11 = vld [vmem:[%s2330_s18 + $0x278] sm:$0xff]  ;;  %v2507_v12 = vld [vmem:[#allocation8 + $0x30] sm:$0xff]  ;;  %v316_v14 = vld [vmem:[%s2330_s18 + $0x220] sm:$0xff]  ;;  %v1929_v17 = vpack.c.bf16 %v310_v8, %v302_v7 }
  0x9c   : > { %1864 = vmatprep.subr.bf16.mxu1 %v1863_v15  ;;  %v324_v15 = vld [vmem:[%s2330_s18 + $0x260] sm:$0xff]  ;;  %v2512_v16 = vld [vmem:[#allocation8 + $0x48] sm:$0xff]  ;;  %v1931_v20 = vpack.c.bf16 %v327_v11, %v319_v10  ;;  %v326_v22 = vld [vmem:[%s2330_s18 + $0x270] sm:$0xff] }
  0x9d   : > { %v341_v19 = vld [vmem:[%s2330_s18 + $0x2e8] sm:$0xff]  ;;  %v1885_v23 = vpack.c.bf16 %v324_v15, %v316_v14  ;;  %v343_v25 = vld [vmem:[%s2330_s18 + $0x2f8] sm:$0xff]  ;;  %v2525_v26 = vld [vmem:[#allocation8 + $0x40] sm:$0xff] }
  0x9e   : > { %1818 = vmatpush1.bf16.msra.mxu0 %v1817_v18  ;;  %v333_v18 = vld [vmem:[%s2330_s18 + $0x2a8] sm:$0xff]  ;;  %v332_v28 = vld [vmem:[%s2330_s18 + $0x2a0] sm:$0xff]  ;;  %v334_v36 = vld [vmem:[%s2330_s18 + $0x2b0] sm:$0xff] }
  0x9f   : > { %1868 = vmatprep.subr.bf16.mxu0 %v1867_v21  ;;  %1866 = vmatpush1.bf16.msra.mxu1 %v1865_v24  ;;  %v318_v21 = vld [vmem:[%s2330_s18 + $0x230] sm:$0xff]  ;;  %v335_v24 = vld [vmem:[%s2330_s18 + $0x2b8] sm:$0xff]  ;;  %v340_v29 = vld [vmem:[%s2330_s18 + $0x2e0] sm:$0xff] }
  0xa0   : > { %1916 = vmatprep.subr.bf16.mxu1 %v1915_v27  ;;  %v1887_v27 = vpack.c.bf16 %v341_v19, %v333_v18  ;;  %v1933_v32 = vpack.c.bf16 %v326_v22, %v318_v21  ;;  %v349_v33 = vld [vmem:[%s2330_s18 + $0x328] sm:$0xff]  ;;  %v1935_v35 = vpack.c.bf16 %v343_v25, %v335_v24  ;;  %v1889_v38 = vpack.c.bf16 %v340_v29, %v332_v28  ;;  %v351_v39 = vld [vmem:[%s2330_s18 + $0x338] sm:$0xff]  ;;  %v2543_v43 = vld [vmem:[#allocation8 + $0x50] sm:$0xff] }
  0xa1   : > { %536 = vmatmul.mubr.f32.vlgmr.msra.gmra.mrb[0].mxu0 %v2454_v30  ;;  %v356_v46 = vld [vmem:[%s2330_s18 + $0x360] sm:$0xff]  ;;  %v373_v50 = vld [vmem:[%s2330_s18 + $0x3e8] sm:$0xff]  ;;  %v358_v54 = vld [vmem:[%s2330_s18 + $0x370] sm:$0xff] }
  0xa2   : > { %1870 = vmatpush1.bf16.msra.mxu0 %v1869_v31  ;;  %1740 = vmatprep.mubr.msk.f32.mxu0 %vm452_vm1, %v2462_v40  ;;  %v2530_v31 = vld [vmem:[#allocation8 + $0x58] sm:$0xff]  ;;  %v372_v60 = vld [vmem:[%s2330_s18 + $0x3e0] sm:$0xff]  ;;  %v389_v0 = vld [vmem:[%s2330_s18 + $0x468] sm:$0xff] }
  0xa3   : > { %637 = vmatmul.mubr.f32.vlgmr.msra.gmra.mrb[0].mxu1 %v2454_v30  ;;  %1872 = vmatprep.subr.bf16.mxu0 %v1871_v34  ;;  %v357_v34 = vld [vmem:[%s2330_s18 + $0x368] sm:$0xff]  ;;  %v375_v57 = vld [vmem:[%s2330_s18 + $0x3f8] sm:$0xff]  ;;  %v374_v4 = vld [vmem:[%s2330_s18 + $0x3f0] sm:$0xff] }
  0xa4   : > { %1918 = vmatpush1.bf16.msra.mxu1 %v1917_v37  ;;  %1746 = vmatprep.mubr.msk.f32.mxu1 %vm452_vm1, %v2462_v40  ;;  %v342_v37 = vld [vmem:[%s2330_s18 + $0x2f0] sm:$0xff]  ;;  %v1891_v44 = vpack.c.bf16 %v357_v34, %v349_v33  ;;  %v391_v7 = vld [vmem:[%s2330_s18 + $0x478] sm:$0xff]  ;;  %v388_v10 = vld [vmem:[%s2330_s18 + $0x460] sm:$0xff] }
  0xa5   : > { %1920 = vmatprep.subr.bf16.mxu1 %v1919_v41  ;;  %542 = vmatmul.mubr.f32.gmra.mrb[2].mxu0 %v2471_v48  ;;  %v359_v41 = vld [vmem:[%s2330_s18 + $0x378] sm:$0xff]  ;;  %v1937_v47 = vpack.c.bf16 %v342_v37, %v334_v36  ;;  %v397_v11 = vld [vmem:[%s2330_s18 + $0x4a8] sm:$0xff]  ;;  %v382_v15 = vld [vmem:[%s2330_s18 + $0x430] sm:$0xff] }
  0xa6   : > { %1874 = vmatpush1.bf16.msra.mxu0 %v1873_v45  ;;  %1741 = vmatprep.mubr.msk.f32.mxu0 %vm452_vm1, %v2476_v52  ;;  %v348_v45 = vld [vmem:[%s2330_s18 + $0x320] sm:$0xff]  ;;  %v1939_v51 = vpack.c.bf16 %v359_v41, %v351_v39  ;;  %v399_v19 = vld [vmem:[%s2330_s18 + $0x4b8] sm:$0xff]  ;;  %v413_v25 = vld [vmem:[%s2330_s18 + $0x528] sm:$0xff] }
  0xa7   : > { %1876 = vmatprep.subr.bf16.mxu0 %v1875_v49  ;;  %643 = vmatmul.mubr.f32.gmra.mrb[2].mxu1 %v2471_v48  ;;  %v365_v49 = vld [vmem:[%s2330_s18 + $0x3a8] sm:$0xff]  ;;  %v1893_v55 = vpack.c.bf16 %v356_v46, %v348_v45  ;;  %v396_v22 = vld [vmem:[%s2330_s18 + $0x4a0] sm:$0xff]  ;;  %v398_v29 = vld [vmem:[%s2330_s18 + $0x4b0] sm:$0xff] }
  0xa8   : > { %1922 = vmatpush1.bf16.msra.mxu1 %v1921_v53  ;;  %1747 = vmatprep.mubr.msk.f32.mxu1 %vm452_vm1, %v2476_v52  ;;  %v350_v53 = vld [vmem:[%s2330_s18 + $0x330] sm:$0xff]  ;;  %v1895_v58 = vpack.c.bf16 %v373_v50, %v365_v49  ;;  %v415_v34 = vld [vmem:[%s2330_s18 + $0x538] sm:$0xff]  ;;  %v412_v37 = vld [vmem:[%s2330_s18 + $0x520] sm:$0xff] }
  0xa9   : > { %1924 = vmatprep.subr.bf16.mxu1 %v1923_v56  ;;  %548 = vmatmul.mubr.f32.gmra.mrb[4].mxu0 %v2489_v62  ;;  %v367_v56 = vld [vmem:[%s2330_s18 + $0x3b8] sm:$0xff]  ;;  %v1941_v61 = vpack.c.bf16 %v358_v54, %v350_v53  ;;  %v429_v41 = vld [vmem:[%s2330_s18 + $0x5a8] sm:$0xff]  ;;  %v414_v46 = vld [vmem:[%s2330_s18 + $0x530] sm:$0xff] }
  0xaa   : > { %1878 = vmatpush1.bf16.msra.mxu0 %v1877_v59  ;;  %1742 = vmatprep.mubr.msk.f32.mxu0 %vm452_vm1, %v2494_v2  ;;  %v364_v59 = vld [vmem:[%s2330_s18 + $0x3a0] sm:$0xff]  ;;  %v1943_v1 = vpack.c.bf16 %v375_v57, %v367_v56  ;;  %v431_v50 = vld [vmem:[%s2330_s18 + $0x5b8] sm:$0xff] }
  0xab   : > { %1880 = vmatprep.subr.bf16.mxu0 %v1879_v63  ;;  %649 = vmatmul.mubr.f32.gmra.mrb[4].mxu1 %v2489_v62  ;;  %v381_v63 = vld [vmem:[%s2330_s18 + $0x428] sm:$0xff]  ;;  %v1897_v5 = vpack.c.bf16 %v372_v60, %v364_v59  ;;  %v428_v54 = vld [vmem:[%s2330_s18 + $0x5a0] sm:$0xff]  ;;  %v438_v59 = vld [vmem:[%s2330_s18 + $0x5f0] sm:$0xff] }
  0xac   : > { %1926 = vmatpush1.bf16.msra.mxu1 %v1925_v3  ;;  %1748 = vmatprep.mubr.msk.f32.mxu1 %vm452_vm1, %v2494_v2  ;;  %v366_v3 = vld [vmem:[%s2330_s18 + $0x3b0] sm:$0xff]  ;;  %v1899_v8 = vpack.c.bf16 %v389_v0, %v381_v63 }
  0xad   : > { %1928 = vmatprep.subr.bf16.mxu1 %v1927_v6  ;;  %554 = vmatmul.mubr.f32.gmra.mrb[6].mxu0 %v2507_v12  ;;  %v383_v6 = vld [vmem:[%s2330_s18 + $0x438] sm:$0xff] }
  0xae   : > { %1882 = vmatpush1.bf16.msra.mxu0 %v1881_v9  ;;  %1743 = vmatprep.mubr.msk.f32.mxu0 %vm452_vm1, %v2512_v16  ;;  %v380_v9 = vld [vmem:[%s2330_s18 + $0x420] sm:$0xff]  ;;  %v1947_v14 = vpack.c.bf16 %v391_v7, %v383_v6 }
  0xaf   : > { %1884 = vmatprep.subr.bf16.mxu0 %v1883_v13  ;;  %655 = vmatmul.mubr.f32.gmra.mrb[6].mxu1 %v2507_v12  ;;  %v405_v13 = vld [vmem:[%s2330_s18 + $0x4e8] sm:$0xff]  ;;  %v1901_v18 = vpack.c.bf16 %v388_v10, %v380_v9 }
  0xb0   : > { %1930 = vmatpush1.bf16.msra.mxu1 %v1929_v17  ;;  %1749 = vmatprep.mubr.msk.f32.mxu1 %vm452_vm1, %v2512_v16  ;;  %v390_v17 = vld [vmem:[%s2330_s18 + $0x470] sm:$0xff]  ;;  %v1903_v21 = vpack.c.bf16 %v405_v13, %v397_v11 }
  0xb1   : > { %1932 = vmatprep.subr.bf16.mxu1 %v1931_v20  ;;  %560 = vmatmul.mubr.f32.gmra.mrb[8].mxu0 %v2525_v26  ;;  %v407_v20 = vld [vmem:[%s2330_s18 + $0x4f8] sm:$0xff]  ;;  %v1949_v24 = vpack.c.bf16 %v390_v17, %v382_v15 }
  0xb2   : > { %1886 = vmatpush1.bf16.msra.mxu0 %v1885_v23  ;;  %1744 = vmatprep.mubr.msk.f32.mxu0 %vm452_vm1, %v2530_v31  ;;  %v404_v23 = vld [vmem:[%s2330_s18 + $0x4e0] sm:$0xff]  ;;  %v1951_v28 = vpack.c.bf16 %v407_v20, %v399_v19 }
  0xb3   : > { %1888 = vmatprep.subr.bf16.mxu0 %v1887_v27  ;;  %661 = vmatmul.mubr.f32.gmra.mrb[8].mxu1 %v2525_v26  ;;  %v421_v27 = vld [vmem:[%s2330_s18 + $0x568] sm:$0xff]  ;;  %v1905_v33 = vpack.c.bf16 %v404_v23, %v396_v22 }
  0xb4   : > { %1934 = vmatpush1.bf16.msra.mxu1 %v1933_v32  ;;  %1750 = vmatprep.mubr.msk.f32.mxu1 %vm452_vm1, %v2530_v31  ;;  %v406_v32 = vld [vmem:[%s2330_s18 + $0x4f0] sm:$0xff]  ;;  %v1907_v36 = vpack.c.bf16 %v421_v27, %v413_v25 }
  0xb5   : > { %1936 = vmatprep.subr.bf16.mxu1 %v1935_v35  ;;  %566 = vmatmul.mubr.f32.gmra.mrb[10].mxu0 %v2543_v43  ;;  %v423_v35 = vld [vmem:[%s2330_s18 + $0x578] sm:$0xff]  ;;  %v1953_v39 = vpack.c.bf16 %v406_v32, %v398_v29 }
  0xb6   : > { %1890 = vmatpush1.bf16.msra.mxu0 %v1889_v38  ;;  %1751 = vmatprep.mubr.msk.f32.mxu0 %vm452_vm1, %v2414_v42  ;;  %v420_v38 = vld [vmem:[%s2330_s18 + $0x560] sm:$0xff]  ;;  %v1955_v45 = vpack.c.bf16 %v423_v35, %v415_v34 }
  0xb7   : > { %1892 = vmatprep.subr.bf16.mxu0 %v1891_v44  ;;  %667 = vmatmul.mubr.f32.gmra.mrb[10].mxu1 %v2543_v43  ;;  %v437_v44 = vld [vmem:[%s2330_s18 + $0x5e8] sm:$0xff]  ;;  %v1909_v49 = vpack.c.bf16 %v420_v38, %v412_v37 }
  0xb8   : > { %1938 = vmatpush1.bf16.msra.mxu1 %v1937_v47  ;;  %1757 = vmatprep.mubr.msk.f32.mxu1 %vm452_vm1, %v2414_v42  ;;  %v1945_v42 = vpack.c.bf16 %v374_v4, %v366_v3  ;;  %v422_v47 = vld [vmem:[%s2330_s18 + $0x570] sm:$0xff]  ;;  %v1911_v53 = vpack.c.bf16 %v437_v44, %v429_v41 }
  0xb9   : > { %1940 = vmatprep.subr.bf16.mxu1 %v1939_v51  ;;  %v439_v51 = vld [vmem:[%s2330_s18 + $0x5f8] sm:$0xff]  ;;  %v1957_v56 = vpack.c.bf16 %v422_v47, %v414_v46 }
  0xba   : > { %1894 = vmatpush1.bf16.msra.mxu0 %v1893_v55  ;;  %v436_v55 = vld [vmem:[%s2330_s18 + $0x5e0] sm:$0xff]  ;;  %v1959_v57 = vpack.c.bf16 %v439_v51, %v431_v50 }
  0xbb   : > { %1896 = vmatprep.subr.bf16.mxu0 %v1895_v58  ;;  %v430_v58 = vld [vmem:[%s2330_s18 + $0x5b0] sm:$0xff]  ;;  %v1913_v60 = vpack.c.bf16 %v436_v55, %v428_v54 }
  0xbc   : > { %1942 = vmatpush1.bf16.msra.mxu1 %v1941_v61  ;;  %v1961_v61 = vpack.c.bf16 %v438_v59, %v430_v58 }
  0xbd   : > { %1944 = vmatprep.subr.bf16.mxu1 %v1943_v1 }
  0xbe   : > { %1898 = vmatpush1.bf16.msra.mxu0 %v1897_v5 }
  0xbf   : > { %1900 = vmatprep.subr.bf16.mxu0 %v1899_v8 }
  0xc0   : > { %1946 = vmatpush1.bf16.msra.mxu1 %v1945_v42 }
  0xc1   : > { %1948 = vmatprep.subr.bf16.mxu1 %v1947_v14 }
  0xc2   : > { %1902 = vmatpush1.bf16.msra.mxu0 %v1901_v18 }
  0xc3   : > { %1904 = vmatprep.subr.bf16.mxu0 %v1903_v21 }
  0xc4   : > { %1950 = vmatpush1.bf16.msra.mxu1 %v1949_v24 }
  0xc5   : > { %1952 = vmatprep.subr.bf16.mxu1 %v1951_v28 }
  0xc6   : > { %1906 = vmatpush1.bf16.msra.mxu0 %v1905_v33 }
  0xc7   : > { %1908 = vmatprep.subr.bf16.mxu0 %v1907_v36 }
  0xc8   : > { %1954 = vmatpush1.bf16.msra.mxu1 %v1953_v39 }
  0xc9   : > { %1956 = vmatprep.subr.bf16.mxu1 %v1955_v45 }
  0xca   : > { %1910 = vmatpush1.bf16.msra.mxu0 %v1909_v49 }
  0xcb   : > { %1912 = vmatprep.subr.bf16.mxu0 %v1911_v53 }
  0xcc   : > { %1958 = vmatpush1.bf16.msra.mxu1 %v1957_v56 }
  0xcd   : > { %1960 = vmatprep.subr.bf16.mxu1 %v1959_v57 }
  0xce   : > { %1914 = vmatpush1.bf16.msra.mxu0 %v1913_v60 }
  0xd0   : > { %1962 = vmatpush1.bf16.msra.mxu1 %v1961_v61 }
  0xd1   : > { %738 = vmatmul.mubr.f32.vlgmr.msra.gmra.mrb[12].mxu0 %v2454_v30 }
  0xd2   : > { %1752 = vmatprep.mubr.msk.f32.mxu0 %vm452_vm1, %v2462_v40 }
  0xd3   : > { %839 = vmatmul.mubr.f32.vlgmr.msra.gmra.mrb[12].mxu1 %v2454_v30  ;;  %v875_v30 = vlaneseq }
  0xd4   : > { %1758 = vmatprep.mubr.msk.f32.mxu1 %vm452_vm1, %v2462_v40 }
  0xd5   : > { %744 = vmatmul.mubr.f32.gmra.mrb[14].mxu0 %v2471_v48  ;;  %v2630_v40 = vand.u32 127, %v875_v30 }
  0xd6   : > { %1753 = vmatprep.mubr.msk.f32.mxu0 %vm452_vm1, %v2476_v52 }
  0xd7   : > { %845 = vmatmul.mubr.f32.gmra.mrb[14].mxu1 %v2471_v48  ;;  %v2633_v48 = vstv %s1763_s25 }
  0xd8   : > { %1759 = vmatprep.mubr.msk.f32.mxu1 %vm452_vm1, %v2476_v52  ;;  %v877_v52 = vadd.s32 128, %v2630_v40 }
  0xd9   : > { %750 = vmatmul.mubr.f32.gmra.mrb[16].mxu0 %v2489_v62 }
  0xda   : > { %1754 = vmatprep.mubr.msk.f32.mxu0 %vm452_vm1, %v2494_v2 }
  0xdb   : > { %851 = vmatmul.mubr.f32.gmra.mrb[16].mxu1 %v2489_v62  ;;  %v878_v62 = vadd.s32 256, %v2630_v40 }
  0xdc   : > { %1760 = vmatprep.mubr.msk.f32.mxu1 %vm452_vm1, %v2494_v2  ;;  %v879_v2 = vadd.s32 384, %v2630_v40 }
  0xdd   : > { %756 = vmatmul.mubr.f32.gmra.mrb[18].mxu0 %v2507_v12 }
  0xde   : > { %1755 = vmatprep.mubr.msk.f32.mxu0 %vm452_vm1, %v2512_v16 }
  0xdf   : > { %857 = vmatmul.mubr.f32.gmra.mrb[18].mxu1 %v2507_v12  ;;  %v2640_v12 = vadd.s32 %v2633_v48, %v2630_v40 }
  0xe0   : > { %1761 = vmatprep.mubr.msk.f32.mxu1 %vm452_vm1, %v2512_v16  ;;  %v2643_v16 = vadd.s32 %v2633_v48, %v877_v52 }
  0xe1   : > { %762 = vmatmul.mubr.f32.gmra.mrb[20].mxu0 %v2525_v26  ;;  %vm894_vm2 = vcmp.lt.s32.totalorder %v2640_v12, 1600 }
  0xe2   : > { %1756 = vmatprep.mubr.msk.f32.mxu0 %vm452_vm1, %v2530_v31  ;;  %vm895_vm3 = vcmp.lt.s32.totalorder %v2643_v16, 1600 }
  0xe3   : > { %863 = vmatmul.mubr.f32.gmra.mrb[20].mxu1 %v2525_v26  ;;  %v2646_v26 = vadd.s32 %v2633_v48, %v878_v62 }
  0xe4   : > { %1762 = vmatprep.mubr.msk.f32.mxu1 %vm452_vm1, %v2530_v31  ;;  %v2649_v31 = vadd.s32 %v2633_v48, %v879_v2 }
  0xe5   : > { %768 = vmatmul.mubr.f32.gmra.mrb[22].mxu0 %v2543_v43  ;;  %vm896_vm4 = vcmp.lt.s32.totalorder %v2646_v26, 1600  ;;  %v880_v26 = vadd.s32 512, %v2630_v40 }
  0xe6   : > { %vm897_vm5 = vcmp.lt.s32.totalorder %v2649_v31, 1600  ;;  %v882_v31 = vadd.s32 768, %v2630_v40 }
  0xe7   : > { %869 = vmatmul.mubr.f32.gmra.mrb[22].mxu1 %v2543_v43 }
 0x174   : > { %v537_v43 = vpop.f32.mrb[0].mxu0 }
 0x175   : > { %v902_v63 = vsel %vm894_vm2, %v537_v43, 0.0  ;;  %v539_v0 = vpop.f32.mrb[1].mxu0 }
 0x176   : > { %954 = vst [vmem:[%s2657_s29] sm:$0xff] %v902_v63  ;;  %v1081_v1 = vmul.f32 %v902_v63, %v902_v63  ;;  %v903_v3 = vsel %vm895_vm3, %v539_v0, 0.0  ;;  %v638_v4 = vpop.f32.mrb[0].mxu1 }
 0x177   : > { %955 = vst [vmem:[%s2657_s29 + $0x8] sm:$0xff] %v903_v3  ;;  %v1008_v5 = vadd.f32 %v903_v3, %v902_v63  ;;  %v1082_v6 = vmul.f32 %v903_v3, %v903_v3  ;;  %v904_v7 = vsel %vm896_vm4, %v638_v4, 0.0  ;;  %v640_v8 = vpop.f32.mrb[1].mxu1 }
 0x178   : > { %956 = vst [vmem:[%s2657_s29 + $0x10] sm:$0xff] %v904_v7  ;;  %v1083_v9 = vmul.f32 %v904_v7, %v904_v7  ;;  %v905_v10 = vsel %vm897_vm5, %v640_v8, 0.0  ;;  %v543_v42 = vpop.f32.mrb[2].mxu0 }
 0x179   : > { %v1129_v11 = vadd.f32 %v1082_v6, %v1081_v1  ;;  %v1009_v13 = vadd.f32 %v1008_v5, %v904_v7  ;;  %957 = vst [vmem:[%s2657_s29 + $0x18] sm:$0xff] %v905_v10  ;;  %v1084_v14 = vmul.f32 %v905_v10, %v905_v10  ;;  %v910_v15 = vsel %vm894_vm2, %v543_v42, 0.0  ;;  %v545_v17 = vpop.f32.mrb[3].mxu0 }
 0x17a   : > { %962 = vst [vmem:[%s2657_s29 + $0x80] sm:$0xff] %v910_v15  ;;  %v1089_v18 = vmul.f32 %v910_v15, %v910_v15  ;;  %v911_v19 = vsel %vm895_vm3, %v545_v17, 0.0  ;;  %v644_v20 = vpop.f32.mrb[2].mxu1 }
 0x17b   : > { %v1130_v21 = vadd.f32 %v1129_v11, %v1083_v9  ;;  %v2674_v22 = vadd.f32 %v1009_v13, %v905_v10  ;;  %963 = vst [vmem:[%s2657_s29 + $0x88] sm:$0xff] %v911_v19  ;;  %v1017_v23 = vadd.f32 %v911_v19, %v910_v15  ;;  %v1090_v24 = vmul.f32 %v911_v19, %v911_v19  ;;  %v646_v25 = vpop.f32.mrb[3].mxu1 }
 0x17c   : > { %v912_v27 = vsel %vm896_vm4, %v644_v20, 0.0  ;;  %v549_v28 = vpop.f32.mrb[4].mxu0  ;;  %v913_v29 = vsel %vm897_vm5, %v646_v25, 0.0 }
 0x17d   : > { %v2681_v32 = vadd.f32 %v1130_v21, %v1084_v14  ;;  %v1138_v33 = vadd.f32 %v1090_v24, %v1089_v18  ;;  %964 = vst [vmem:[%s2657_s29 + $0x90] sm:$0xff] %v912_v27  ;;  %v1018_v34 = vadd.f32 %v1017_v23, %v912_v27  ;;  %v1091_v35 = vmul.f32 %v912_v27, %v912_v27  ;;  %v551_v36 = vpop.f32.mrb[5].mxu0 }
 0x17e   : > { %965 = vst [vmem:[%s2657_s29 + $0x98] sm:$0xff] %v913_v29  ;;  %v918_v37 = vsel %vm894_vm2, %v549_v28, 0.0  ;;  %v919_v38 = vsel %vm895_vm3, %v551_v36, 0.0  ;;  %v1092_v39 = vmul.f32 %v913_v29, %v913_v29  ;;  %v650_v41 = vpop.f32.mrb[4].mxu1 }
 0x17f   : > { %v1139_v44 = vadd.f32 %v1138_v33, %v1091_v35  ;;  %970 = vst [vmem:[%s2657_s29 + $0x100] sm:$0xff] %v918_v37  ;;  %v1097_v45 = vmul.f32 %v918_v37, %v918_v37  ;;  %971 = vst [vmem:[%s2657_s29 + $0x108] sm:$0xff] %v919_v38  ;;  %v1026_v46 = vadd.f32 %v919_v38, %v918_v37  ;;  %v652_v49 = vpop.f32.mrb[5].mxu1  ;;  %v920_v51 = vsel %vm896_vm4, %v650_v41, 0.0 }
 0x180   : > { %v1098_v47 = vmul.f32 %v919_v38, %v919_v38  ;;  %v2691_v50 = vadd.f32 %v1018_v34, %v913_v29  ;;  %v555_v53 = vpop.f32.mrb[6].mxu0  ;;  %v921_v54 = vsel %vm897_vm5, %v652_v49, 0.0  ;;  %972 = vst [vmem:[%s2657_s29 + $0x110] sm:$0xff] %v920_v51  ;;  %v1099_v58 = vmul.f32 %v920_v51, %v920_v51 }
 0x181   : > { %v2697_v56 = vadd.f32 %v1139_v44, %v1092_v39  ;;  %v1027_v57 = vadd.f32 %v1026_v46, %v920_v51  ;;  %v557_v59 = vpop.f32.mrb[7].mxu0  ;;  %973 = vst [vmem:[%s2657_s29 + $0x118] sm:$0xff] %v921_v54  ;;  %v926_v60 = vsel %vm894_vm2, %v555_v53, 0.0  ;;  %v1100_v30 = vmul.f32 %v921_v54, %v921_v54 }
 0x182   : > { %v1147_v55 = vadd.f32 %v1098_v47, %v1097_v45  ;;  %v927_v61 = vsel %vm895_vm3, %v557_v59, 0.0  ;;  %v656_v52 = vpop.f32.mrb[6].mxu1  ;;  %978 = vst [vmem:[%s2657_s29 + $0x180] sm:$0xff] %v926_v60  ;;  %v1105_v2 = vmul.f32 %v926_v60, %v926_v60 }
 0x183   : > { %979 = vst [vmem:[%s2657_s29 + $0x188] sm:$0xff] %v927_v61  ;;  %v1035_v43 = vadd.f32 %v927_v61, %v926_v60  ;;  %v1106_v63 = vmul.f32 %v927_v61, %v927_v61  ;;  %v658_v0 = vpop.f32.mrb[7].mxu1  ;;  %v2707_v1 = vadd.f32 %v1027_v57, %v921_v54  ;;  %v928_v3 = vsel %vm896_vm4, %v656_v52, 0.0 }
 0x184   : > { %v1148_v62 = vadd.f32 %v1147_v55, %v1099_v58  ;;  %v561_v4 = vpop.f32.mrb[8].mxu0  ;;  %v929_v5 = vsel %vm897_vm5, %v658_v0, 0.0  ;;  %980 = vst [vmem:[%s2657_s29 + $0x190] sm:$0xff] %v928_v3  ;;  %v1107_v9 = vmul.f32 %v928_v3, %v928_v3  ;;  %v881_v60 = vadd.s32 640, %v2630_v40 }
 0x185   : > { %v1156_v6 = vadd.f32 %v1106_v63, %v1105_v2  ;;  %v1036_v8 = vadd.f32 %v1035_v43, %v928_v3  ;;  %v563_v10 = vpop.f32.mrb[9].mxu0  ;;  %981 = vst [vmem:[%s2657_s29 + $0x198] sm:$0xff] %v929_v5  ;;  %v934_v42 = vsel %vm894_vm2, %v561_v4, 0.0  ;;  %v1108_v13 = vmul.f32 %v929_v5, %v929_v5 }
 0x186   : > { %v2713_v7 = vadd.f32 %v1148_v62, %v1100_v30  ;;  %v935_v11 = vsel %vm895_vm3, %v563_v10, 0.0  ;;  %v662_v14 = vpop.f32.mrb[8].mxu1  ;;  %986 = vst [vmem:[%s2657_s29 + $0x200] sm:$0xff] %v934_v42  ;;  %v1113_v17 = vmul.f32 %v934_v42, %v934_v42  ;;  %v883_v61 = vadd.s32 896, %v2630_v40 }
 0x187   : > { %v1157_v15 = vadd.f32 %v1156_v6, %v1107_v9  ;;  %987 = vst [vmem:[%s2657_s29 + $0x208] sm:$0xff] %v935_v11  ;;  %v1044_v18 = vadd.f32 %v935_v11, %v934_v42  ;;  %v1114_v19 = vmul.f32 %v935_v11, %v935_v11  ;;  %v664_v20 = vpop.f32.mrb[9].mxu1  ;;  %v2723_v21 = vadd.f32 %v1036_v8, %v929_v5 }
 0x188   : > { %v936_v23 = vsel %vm896_vm4, %v662_v14, 0.0  ;;  %v567_v24 = vpop.f32.mrb[10].mxu0  ;;  %v937_v25 = vsel %vm897_vm5, %v664_v20, 0.0  ;;  %v2758_v30 = vadd.s32 %v2633_v48, %v880_v26  ;;  %v2761_v52 = vadd.s32 %v2633_v48, %v881_v60 }
 0x189   : > { %v1165_v27 = vadd.f32 %v1114_v19, %v1113_v17  ;;  %v2729_v28 = vadd.f32 %v1157_v15, %v1108_v13  ;;  %988 = vst [vmem:[%s2657_s29 + $0x210] sm:$0xff] %v936_v23  ;;  %v1045_v29 = vadd.f32 %v1044_v18, %v936_v23  ;;  %v1115_v33 = vmul.f32 %v936_v23, %v936_v23  ;;  %v569_v34 = vpop.f32.mrb[11].mxu0 }
 0x18a   : > { %989 = vst [vmem:[%s2657_s29 + $0x218] sm:$0xff] %v937_v25  ;;  %v942_v35 = vsel %vm894_vm2, %v567_v24, 0.0  ;;  %v943_v36 = vsel %vm895_vm3, %v569_v34, 0.0  ;;  %v1116_v37 = vmul.f32 %v937_v25, %v937_v25  ;;  %v668_v38 = vpop.f32.mrb[10].mxu1  ;;  %v2764_v62 = vadd.s32 %v2633_v48, %v882_v31 }
 0x18b   : > { %v1166_v39 = vadd.f32 %v1165_v27, %v1115_v33  ;;  %994 = vst [vmem:[%s2657_s29 + $0x280] sm:$0xff] %v942_v35  ;;  %v1121_v41 = vmul.f32 %v942_v35, %v942_v35  ;;  %995 = vst [vmem:[%s2657_s29 + $0x288] sm:$0xff] %v943_v36  ;;  %v1053_v44 = vadd.f32 %v943_v36, %v942_v35  ;;  %v670_v46 = vpop.f32.mrb[11].mxu1  ;;  %v944_v12 = vsel %vm896_vm4, %v668_v38, 0.0 }
 0x18c   : > { %v1122_v45 = vmul.f32 %v943_v36, %v943_v36  ;;  %v2739_v47 = vadd.f32 %v1045_v29, %v937_v25  ;;  %v945_v16 = vsel %vm897_vm5, %v670_v46, 0.0  ;;  %996 = vst [vmem:[%s2657_s29 + $0x290] sm:$0xff] %v944_v12  ;;  %v1123_v54 = vmul.f32 %v944_v12, %v944_v12 }
 0x18d   : > { %v2745_v51 = vadd.f32 %v1166_v39, %v1116_v37  ;;  %v1054_v53 = vadd.f32 %v1053_v44, %v944_v12  ;;  %997 = vst [vmem:[%s2657_s29 + $0x298] sm:$0xff] %v945_v16  ;;  %v1124_v55 = vmul.f32 %v945_v16, %v945_v16  ;;  %v2767_v2 = vadd.s32 %v2633_v48, %v883_v61 }
 0x18e   : > { %v1174_v49 = vadd.f32 %v1122_v45, %v1121_v41  ;;  %vm898_vm6 = vcmp.lt.s32.totalorder %v2758_v30, 1600  ;;  %vm899_vm7 = vcmp.lt.s32.totalorder %v2761_v52, 1600  ;;  %vm900_vm8 = vcmp.lt.s32.totalorder %v2764_v62, 1600 }
 0x18f   : > { %v2749_v58 = vadd.f32 %v1054_v53, %v945_v16  ;;  %vm901_vm9 = vcmp.lt.s32.totalorder %v2767_v2, 1600 }
 0x190   : > { %v1175_v57 = vadd.f32 %v1174_v49, %v1123_v54 }
 0x192   : > { %v2751_v59 = vadd.f32 %v1175_v57, %v1124_v55 }
 0x1a4   : > { %v739_v43 = vpop.f32.mrb[12].mxu0 }
 0x1a5   : > { %v906_v40 = vsel %vm898_vm6, %v739_v43, 0.0  ;;  %v741_v63 = vpop.f32.mrb[13].mxu0 }
 0x1a6   : > { %958 = vst [vmem:[%s2657_s29 + $0x20] sm:$0xff] %v906_v40  ;;  %v1011_v0 = vadd.f32 %v2674_v22, %v906_v40  ;;  %v1085_v48 = vmul.f32 %v906_v40, %v906_v40  ;;  %v907_v3 = vsel %vm899_vm7, %v741_v63, 0.0  ;;  %v840_v4 = vpop.f32.mrb[12].mxu1 }
 0x1a7   : > { %959 = vst [vmem:[%s2657_s29 + $0x28] sm:$0xff] %v907_v3  ;;  %v1086_v5 = vmul.f32 %v907_v3, %v907_v3  ;;  %v908_v6 = vsel %vm900_vm8, %v840_v4, 0.0  ;;  %v842_v8 = vpop.f32.mrb[13].mxu1 }
 0x1a8   : > { %v1132_v9 = vadd.f32 %v2681_v32, %v1085_v48  ;;  %v1012_v10 = vadd.f32 %v1011_v0, %v907_v3  ;;  %960 = vst [vmem:[%s2657_s29 + $0x30] sm:$0xff] %v908_v6  ;;  %v745_v42 = vpop.f32.mrb[14].mxu0  ;;  %v909_v22 = vsel %vm901_vm9, %v842_v8, 0.0  ;;  %v1087_v11 = vmul.f32 %v908_v6, %v908_v6 }
 0x1a9   : > { %v914_v13 = vsel %vm898_vm6, %v745_v42, 0.0  ;;  %961 = vst [vmem:[%s2657_s29 + $0x38] sm:$0xff] %v909_v22  ;;  %v747_v14 = vpop.f32.mrb[15].mxu0  ;;  %v1088_v29 = vmul.f32 %v909_v22, %v909_v22 }
 0x1aa   : > { %v1133_v15 = vadd.f32 %v1132_v9, %v1086_v5  ;;  %966 = vst [vmem:[%s2657_s29 + $0xa0] sm:$0xff] %v914_v13  ;;  %v1020_v17 = vadd.f32 %v2691_v50, %v914_v13  ;;  %v1093_v18 = vmul.f32 %v914_v13, %v914_v13  ;;  %v915_v32 = vsel %vm899_vm7, %v747_v14, 0.0  ;;  %v846_v19 = vpop.f32.mrb[14].mxu1 }
 0x1ab   : > { %967 = vst [vmem:[%s2657_s29 + $0xa8] sm:$0xff] %v915_v32  ;;  %v1094_v20 = vmul.f32 %v915_v32, %v915_v32  ;;  %v916_v23 = vsel %vm900_vm8, %v846_v19, 0.0  ;;  %v848_v24 = vpop.f32.mrb[15].mxu1  ;;  %v1013_v25 = vadd.f32 %v1012_v10, %v908_v6 }
 0x1ac   : > { %v1141_v27 = vadd.f32 %v2697_v56, %v1093_v18  ;;  %v1021_v33 = vadd.f32 %v1020_v17, %v915_v32  ;;  %968 = vst [vmem:[%s2657_s29 + $0xb0] sm:$0xff] %v916_v23  ;;  %v751_v50 = vpop.f32.mrb[16].mxu0  ;;  %v917_v34 = vsel %vm901_vm9, %v848_v24, 0.0  ;;  %v1095_v35 = vmul.f32 %v916_v23, %v916_v23 }
 0x1ad   : > { %v922_v36 = vsel %vm898_vm6, %v751_v50, 0.0  ;;  %969 = vst [vmem:[%s2657_s29 + $0xb8] sm:$0xff] %v917_v34  ;;  %v1014_v37 = vadd.f32 %v1013_v25, %v909_v22  ;;  %v753_v38 = vpop.f32.mrb[17].mxu0  ;;  %v1134_v39 = vadd.f32 %v1133_v15, %v1087_v11  ;;  %v1096_v60 = vmul.f32 %v917_v34, %v917_v34 }
 0x1ae   : > { %v1022_v41 = vadd.f32 %v1021_v33, %v916_v23  ;;  %974 = vst [vmem:[%s2657_s29 + $0x120] sm:$0xff] %v922_v36  ;;  %v1029_v56 = vadd.f32 %v2707_v1, %v922_v36  ;;  %v1101_v44 = vmul.f32 %v922_v36, %v922_v36  ;;  %v923_v45 = vsel %vm899_vm7, %v753_v38, 0.0  ;;  %v852_v46 = vpop.f32.mrb[16].mxu1 }
 0x1af   : > { %1015 = vadd.xlane.f32.xlu0 %v1014_v37  ;;  %975 = vst [vmem:[%s2657_s29 + $0x128] sm:$0xff] %v923_v45  ;;  %v1102_v12 = vmul.f32 %v923_v45, %v923_v45  ;;  %v924_v16 = vsel %vm900_vm8, %v852_v46, 0.0  ;;  %v854_v49 = vpop.f32.mrb[17].mxu1  ;;  %v1135_v53 = vadd.f32 %v1134_v39, %v1088_v29  ;;  %v1142_v54 = vadd.f32 %v1141_v27, %v1094_v20 }
 0x1b0   : > { %v1150_v55 = vadd.f32 %v2713_v7, %v1101_v44  ;;  %v1030_v57 = vadd.f32 %v1029_v56, %v923_v45  ;;  %v757_v1 = vpop.f32.mrb[18].mxu0  ;;  %976 = vst [vmem:[%s2657_s29 + $0x130] sm:$0xff] %v924_v16  ;;  %v925_v26 = vsel %vm901_vm9, %v854_v49, 0.0  ;;  %v1103_v61 = vmul.f32 %v924_v16, %v924_v16 }
 0x1b1   : > { %v930_v31 = vsel %vm898_vm6, %v757_v1, 0.0  ;;  %977 = vst [vmem:[%s2657_s29 + $0x138] sm:$0xff] %v925_v26  ;;  %v759_v43 = vpop.f32.mrb[19].mxu0  ;;  %v1143_v40 = vadd.f32 %v1142_v54, %v1095_v35  ;;  %v1023_v63 = vadd.f32 %v1022_v41, %v917_v34  ;;  %v1104_v5 = vmul.f32 %v925_v26, %v925_v26 }
 0x1b2   : > { %v1151_v0 = vadd.f32 %v1150_v55, %v1102_v12  ;;  %982 = vst [vmem:[%s2657_s29 + $0x1a0] sm:$0xff] %v930_v31  ;;  %v1038_v7 = vadd.f32 %v2723_v21, %v930_v31  ;;  %v1109_v48 = vmul.f32 %v930_v31, %v930_v31  ;;  %v1031_v3 = vadd.f32 %v1030_v57, %v924_v16  ;;  %v858_v4 = vpop.f32.mrb[18].mxu1 }
 0x1b3   : > { %1136 = vadd.xlane.f32.xlu0 %v1135_v53  ;;  %v931_v6 = vsel %vm899_vm7, %v759_v43, 0.0  ;;  %v932_v8 = vsel %vm900_vm8, %v858_v4, 0.0  ;;  %v1144_v9 = vadd.f32 %v1143_v40, %v1096_v60  ;;  %v860_v10 = vpop.f32.mrb[19].mxu1 }
 0x1b4   : > { %v1159_v42 = vadd.f32 %v2729_v28, %v1109_v48  ;;  %983 = vst [vmem:[%s2657_s29 + $0x1a8] sm:$0xff] %v931_v6  ;;  %v1039_v22 = vadd.f32 %v1038_v7, %v931_v6  ;;  %v1110_v21 = vmul.f32 %v931_v6, %v931_v6  ;;  %984 = vst [vmem:[%s2657_s29 + $0x1b0] sm:$0xff] %v932_v8  ;;  %v763_v13 = vpop.f32.mrb[20].mxu0  ;;  %v933_v15 = vsel %vm901_vm9, %v860_v10, 0.0  ;;  %v1002_v7 = vld [vmem:[#allocation3] sm:$0xff] }
 0x1b5   : > { %v1111_v11 = vmul.f32 %v932_v8, %v932_v8  ;;  %1145 = vadd.xlane.f32.xlu1 %v1144_v9  ;;  %v938_v14 = vsel %vm898_vm6, %v763_v13, 0.0  ;;  %v765_v17 = vpop.f32.mrb[21].mxu0  ;;  %v1032_v18 = vadd.f32 %v1031_v3, %v925_v26  ;;  %v1152_v32 = vadd.f32 %v1151_v0, %v1103_v61  ;;  %985 = vst [vmem:[%s2657_s29 + $0x1b8] sm:$0xff] %v933_v15  ;;  %v1075_v3 = vld [vmem:[#allocation4] sm:$0xff]  ;;  %v1003_v9 = vld [vmem:[#allocation3 + $0x8] sm:$0xff]  ;;  %v1077_v13 = vld [vmem:[#allocation4 + $0x10] sm:$0xff] }
 0x1b6   : > { %v1160_v19 = vadd.f32 %v1159_v42, %v1110_v21  ;;  %v1040_v28 = vadd.f32 %v1039_v22, %v932_v8  ;;  %990 = vst [vmem:[%s2657_s29 + $0x220] sm:$0xff] %v938_v14  ;;  %v1047_v20 = vadd.f32 %v2739_v47, %v938_v14  ;;  %v1117_v23 = vmul.f32 %v938_v14, %v938_v14  ;;  %v864_v24 = vpop.f32.mrb[20].mxu1  ;;  %v1004_v22 = vld [vmem:[#allocation3 + $0x10] sm:$0xff] }
 0x1b7   : > { %v1112_v25 = vmul.f32 %v933_v15, %v933_v15  ;;  %1024 = vadd.xlane.f32.xlu0 %v1023_v63  ;;  %v939_v27 = vsel %vm899_vm7, %v765_v17, 0.0  ;;  %v940_v29 = vsel %vm900_vm8, %v864_v24, 0.0  ;;  %v866_v33 = vpop.f32.mrb[21].mxu1  ;;  %v1153_v50 = vadd.f32 %v1152_v32, %v1104_v5  ;;  %v1076_v5 = vld [vmem:[#allocation4 + $0x8] sm:$0xff] }
 0x1b8   : > { %v1168_v34 = vadd.f32 %v2745_v51, %v1117_v23  ;;  %991 = vst [vmem:[%s2657_s29 + $0x228] sm:$0xff] %v939_v27  ;;  %v1048_v35 = vadd.f32 %v1047_v20, %v939_v27  ;;  %v1118_v47 = vmul.f32 %v939_v27, %v939_v27  ;;  %992 = vst [vmem:[%s2657_s29 + $0x230] sm:$0xff] %v940_v29  ;;  %v769_v37 = vpop.f32.mrb[22].mxu0  ;;  %v941_v39 = vsel %vm901_vm9, %v866_v33, 0.0  ;;  %v1005_v17 = vld [vmem:[#allocation3 + $0x18] sm:$0xff]  ;;  %v1078_v23 = vld [vmem:[#allocation4 + $0x18] sm:$0xff] }
 0x1b9   : > { %v1119_v36 = vmul.f32 %v940_v29, %v940_v29  ;;  %1033 = vadd.xlane.f32.xlu1 %v1032_v18  ;;  %v946_v38 = vsel %vm898_vm6, %v769_v37, 0.0  ;;  %v771_v41 = vpop.f32.mrb[23].mxu0  ;;  %v1041_v56 = vadd.f32 %v1040_v28, %v933_v15  ;;  %v1161_v44 = vadd.f32 %v1160_v19, %v1111_v11  ;;  %993 = vst [vmem:[%s2657_s29 + $0x238] sm:$0xff] %v941_v39  ;;  %v1006_v19 = vld [vmem:[#allocation3 + $0x20] sm:$0xff]  ;;  %v1079_v27 = vld [vmem:[#allocation4 + $0x20] sm:$0xff] }
 0x1ba   : > { %v1169_v45 = vadd.f32 %v1168_v34, %v1118_v47  ;;  %v1049_v51 = vadd.f32 %v1048_v35, %v940_v29  ;;  %998 = vst [vmem:[%s2657_s29 + $0x2a0] sm:$0xff] %v946_v38  ;;  %v1056_v46 = vadd.f32 %v2749_v58, %v946_v38  ;;  %v1125_v12 = vmul.f32 %v946_v38, %v946_v38  ;;  %v870_v16 = vpop.f32.mrb[22].mxu1 }
 0x1bb   : > { %v1120_v49 = vmul.f32 %v941_v39, %v941_v39  ;;  %1154 = vadd.xlane.f32.xlu0 %v1153_v50  ;;  %v947_v30 = vsel %vm899_vm7, %v771_v41, 0.0  ;;  %v948_v53 = vsel %vm900_vm8, %v870_v16, 0.0  ;;  %v872_v54 = vpop.f32.mrb[23].mxu1  ;;  %v1162_v55 = vadd.f32 %v1161_v44, %v1112_v25  ;;  %v1007_v50 = vld [vmem:[#allocation3 + $0x28] sm:$0xff] }
 0x1bc   : > { %v1177_v57 = vadd.f32 %v2751_v59, %v1125_v12  ;;  %999 = vst [vmem:[%s2657_s29 + $0x2a8] sm:$0xff] %v947_v30  ;;  %v1057_v1 = vadd.f32 %v1056_v46, %v947_v30  ;;  %v1126_v26 = vmul.f32 %v947_v30, %v947_v30  ;;  %1000 = vst [vmem:[%s2657_s29 + $0x2b0] sm:$0xff] %v948_v53  ;;  %v949_v60 = vsel %vm901_vm9, %v872_v54, 0.0 }
 0x1bd   : > { %v1127_v58 = vmul.f32 %v948_v53, %v948_v53  ;;  %1042 = vadd.xlane.f32.xlu1 %v1041_v56  ;;  %v1050_v31 = vadd.f32 %v1049_v51, %v941_v39  ;;  %v1170_v52 = vadd.f32 %v1169_v45, %v1119_v36  ;;  %1001 = vst [vmem:[%s2657_s29 + $0x2b8] sm:$0xff] %v949_v60  ;;  %v1080_v36 = vld [vmem:[#allocation4 + $0x28] sm:$0xff] }
 0x1be   : > { %v1178_v61 = vadd.f32 %v1177_v57, %v1126_v26  ;;  %v1058_v43 = vadd.f32 %v1057_v1, %v948_v53  ;;  %v1128_v62 = vmul.f32 %v949_v60, %v949_v60 }
 0x1bf   : > { %1051 = vadd.xlane.f32.xlu0 %v1050_v31  ;;  %v1171_v40 = vadd.f32 %v1170_v52, %v1120_v49 }
 0x1c0   : > { %v1059_v63 = vadd.f32 %v1058_v43, %v949_v60  ;;  %v1179_v0 = vadd.f32 %v1178_v61, %v1127_v58 }
 0x1c1   : > { %1163 = vadd.xlane.f32.xlu1 %v1162_v55 }
 0x1c2   : > { %v1180_v59 = vadd.f32 %v1179_v0, %v1128_v62 }
 0x1c3   : > { %1172 = vadd.xlane.f32.xlu0 %v1171_v40 }
 0x1c5   : > { %1060 = vadd.xlane.f32.xlu1 %v1059_v63 }
 0x1c9   : > { %1181 = vadd.xlane.f32.xlu1 %v1180_v59 }
 0x23c   : > { %v1016_v48 = vpop.xlane.xlu0 %1015 }
 0x23d   : > { %v1062_v2 = vadd.f32 %v1016_v48, %v1002_v7 }
 0x23f   : > { %1069 = vst.msk [vmem:[#allocation3] sm:$0xff] %vm1068_vm10, %v1062_v2 }
 0x240   : > { %v1137_v4 = vpop.xlane.xlu0 %1136 }
 0x241   : > { %v1183_v6 = vadd.f32 %v1137_v4, %v1075_v3 }
 0x242   : > { %v1146_v8 = vpop.xlane.xlu1 %1145 }
 0x243   : > { %1189 = vst.msk [vmem:[#allocation4] sm:$0xff] %vm1068_vm10, %v1183_v6  ;;  %v1184_v10 = vadd.f32 %v1146_v8, %v1076_v5 }
 0x244   : > { %v1025_v42 = vpop.xlane.xlu0 %1024 }
 0x245   : > { %1190 = vst.msk [vmem:[#allocation4 + $0x8] sm:$0xff] %vm1068_vm10, %v1184_v10  ;;  %v1063_v21 = vadd.f32 %v1025_v42, %v1003_v9 }
 0x246   : > { %v1034_v11 = vpop.xlane.xlu1 %1033 }
 0x247   : > { %1070 = vst.msk [vmem:[#allocation3 + $0x8] sm:$0xff] %vm1068_vm10, %v1063_v21  ;;  %v1064_v14 = vadd.f32 %v1034_v11, %v1004_v22 }
 0x248   : > { %v1155_v15 = vpop.xlane.xlu0 %1154 }
 0x249   : > { %1071 = vst.msk [vmem:[#allocation3 + $0x10] sm:$0xff] %vm1068_vm10, %v1064_v14  ;;  %v1185_v18 = vadd.f32 %v1155_v15, %v1077_v13 }
 0x24a   : > { %v1043_v32 = vpop.xlane.xlu1 %1042 }
 0x24b   : > { %1191 = vst.msk [vmem:[#allocation4 + $0x10] sm:$0xff] %vm1068_vm10, %v1185_v18  ;;  %v1065_v28 = vadd.f32 %v1043_v32, %v1005_v17 }
 0x24c   : > { %v1052_v20 = vpop.xlane.xlu0 %1051 }
 0x24d   : > { %1072 = vst.msk [vmem:[#allocation3 + $0x18] sm:$0xff] %vm1068_vm10, %v1065_v28  ;;  %v1066_v24 = vadd.f32 %v1052_v20, %v1006_v19 }
 0x24e   : > { %v1164_v25 = vpop.xlane.xlu1 %1163 }
 0x24f   : > { %1073 = vst.msk [vmem:[#allocation3 + $0x20] sm:$0xff] %vm1068_vm10, %v1066_v24  ;;  %v1186_v29 = vadd.f32 %v1164_v25, %v1078_v23 }
 0x250   : > { %v1173_v33 = vpop.xlane.xlu0 %1172 }
 0x251   : > { %1192 = vst.msk [vmem:[#allocation4 + $0x18] sm:$0xff] %vm1068_vm10, %v1186_v29  ;;  %v1187_v34 = vadd.f32 %v1173_v33, %v1079_v27 }
 0x252   : > { %v1061_v35 = vpop.xlane.xlu1 %1060 }
 0x253   : > { %1193 = vst.msk [vmem:[#allocation4 + $0x20] sm:$0xff] %vm1068_vm10, %v1187_v34  ;;  %v1067_v47 = vadd.f32 %v1061_v35, %v1007_v50  ;;  %1198 = sbr.rel (%p1765_p6) target bundleno = 810 (0x32a), region = 52 }
 0x255   : > { %1074 = vst.msk [vmem:[#allocation3 + $0x28] sm:$0xff] %vm1068_vm10, %v1067_v47 }
 0x256   : > { %v1182_v37 = vpop.xlane.xlu1 %1181 }
 0x257   : > { %v1188_v38 = vadd.f32 %v1182_v37, %v1080_v36 }
 0x259   : > { %1194 = vst.msk [vmem:[#allocation4 + $0x28] sm:$0xff] %vm1068_vm10, %v1188_v38 }
 0x25a   : > { %v1201_v39 = vld [vmem:[#allocation3 + $0x10] sm:$0xff]  ;;  %v1213_v41 = vld [vmem:[#allocation4 + $0x10] sm:$0xff]  ;;  %v2171_v56 = vmov 0   ;;  %v1202_v49 = vld [vmem:[#allocation3 + $0x18] sm:$0xff] }
 0x25b   : > { %2025 = vset.pattern.permute.xlu1 %v2171_v56  ;;  %2024 = vset.pattern.permute.xlu0 %v2171_v56  ;;  %v2870_v44 = vmul.f32 0.000625, %v1201_v39  ;;  %v1219_v45 = vmul.f32 0.000625, %v1213_v41  ;;  %v1199_v51 = vld [vmem:[#allocation3] sm:$0xff]  ;;  %v1211_v46 = vld [vmem:[#allocation4] sm:$0xff] }
 0x25c   : > { %v2872_v12 = vmul.f32 0.000625, %v1199_v51  ;;  %v1217_v16 = vmul.f32 0.000625, %v1211_v46  ;;  %v2876_v53 = vmul.f32 0.000625, %v1202_v49 }
 0x25d   : > { %v1225_v30 = vmul.f32 %v2870_v44, %v2870_v44  ;;  %v1214_v54 = vld [vmem:[#allocation4 + $0x18] sm:$0xff]  ;;  %v1212_v58 = vld [vmem:[#allocation4 + $0x8] sm:$0xff]  ;;  %v1203_v59 = vld [vmem:[#allocation3 + $0x20] sm:$0xff] }
 0x25e   : > { %v1200_v55 = vld [vmem:[#allocation3 + $0x8] sm:$0xff]  ;;  %v1223_v57 = vmul.f32 %v2872_v12, %v2872_v12  ;;  %v1220_v1 = vmul.f32 0.000625, %v1214_v54  ;;  %v1226_v31 = vmul.f32 %v2876_v53, %v2876_v53  ;;  %v1218_v52 = vmul.f32 0.000625, %v1212_v58  ;;  %v1215_v7 = vld [vmem:[#allocation4 + $0x20] sm:$0xff] }
 0x25f   : > { %v1206_v26 = vmul.f32 0.000625, %v1200_v55  ;;  %v1231_v60 = vsub.f32 %v1219_v45, %v1225_v30  ;;  %v1204_v61 = vld [vmem:[#allocation3 + $0x28] sm:$0xff]  ;;  %v2884_v3 = vmul.f32 0.000625, %v1203_v59  ;;  %v1243_v28 = vld [vmem:[%s3122_s2 + $0x10] sm:$0xff] }
 0x260   : > { %v1216_v43 = vld [vmem:[#allocation4 + $0x28] sm:$0xff]  ;;  %v1229_v62 = vsub.f32 %v1217_v16, %v1223_v57  ;;  %v2882_v63 = vmul.f32 0.000625, %v1204_v61  ;;  %v1232_v2 = vsub.f32 %v1220_v1, %v1226_v31  ;;  %v1221_v4 = vmul.f32 0.000625, %v1215_v7  ;;  %v1241_v20 = vld [vmem:[%s3122_s2] sm:$0xff] }
 0x261   : > { %v1224_v40 = vmul.f32 %v1206_v26, %v1206_v26  ;;  %v1222_v0 = vmul.f32 0.000625, %v1216_v43  ;;  %v1237_v48 = vmax.f32 %v1231_v60, 0.0  ;;  %v1227_v42 = vmul.f32 %v2884_v3, %v2884_v3  ;;  %v1244_v24 = vld [vmem:[%s3122_s2 + $0x18] sm:$0xff]  ;;  %v1242_v29 = vld [vmem:[%s3122_s2 + $0x8] sm:$0xff]  ;;  %v1245_v38 = vld [vmem:[%s3122_s2 + $0x20] sm:$0xff] }
 0x262   : > { %v1235_v5 = vmax.f32 %v1229_v62, 0.0  ;;  %v1228_v8 = vmul.f32 %v2882_v63, %v2882_v63  ;;  %v1238_v10 = vmax.f32 %v1232_v2, 0.0  ;;  %v1246_v36 = vld [vmem:[%s3122_s2 + $0x28] sm:$0xff]  ;;  %v1265_v16 = vld [vmem:[%s3123_s3] sm:$0xff]  ;;  %v1267_v57 = vld [vmem:[%s3123_s3 + $0x10] sm:$0xff] }
 0x263   : > { %v1230_v6 = vsub.f32 %v1218_v52, %v1224_v40  ;;  %v1249_v9 = vadd.f32 0.001, %v1237_v48  ;;  %v1233_v14 = vsub.f32 %v1221_v4, %v1227_v42  ;;  %v1266_v46 = vld [vmem:[%s3123_s3 + $0x8] sm:$0xff]  ;;  %v1269_v60 = vld [vmem:[%s3123_s3 + $0x20] sm:$0xff]  ;;  %v1311_v62 = vld [vmem:[#allocation2 + $0x110] sm:$0xff] }
 0x264   : > { %v1247_v22 = vadd.f32 0.001, %v1235_v5  ;;  %v1234_v11 = vsub.f32 %v1222_v0, %v1228_v8  ;;  %v1250_v13 = vadd.f32 0.001, %v1238_v10  ;;  %v1309_v61 = vld [vmem:[#allocation2 + $0x100] sm:$0xff]  ;;  %v1310_v43 = vld [vmem:[#allocation2 + $0x108] sm:$0xff] }
 0x265   : > { %v1236_v21 = vmax.f32 %v1230_v6, 0.0  ;;  %2026 = vrsqrt.f32 %v1249_v9  ;;  %v1239_v18 = vmax.f32 %v1233_v14, 0.0  ;;  %v1312_v40 = vld [vmem:[#allocation2 + $0x118] sm:$0xff]  ;;  %v1314_v0 = vld [vmem:[#allocation2 + $0x128] sm:$0xff]  ;;  %v1315_v59 = vld [vmem:[#allocation2 + $0x130] sm:$0xff] }
 0x266   : > { %2028 = vrsqrt.f32 %v1247_v22  ;;  %v1240_v17 = vmax.f32 %v1234_v11, 0.0  ;;  %v1316_v7 = vld [vmem:[#allocation2 + $0x138] sm:$0xff]  ;;  %v1317_v48 = vld [vmem:[#allocation2 + $0x140] sm:$0xff]  ;;  %v1318_v2 = vld [vmem:[#allocation2 + $0x148] sm:$0xff] }
 0x267   : > { %v1248_v15 = vadd.f32 0.001, %v1236_v21  ;;  %2030 = vrsqrt.f32 %v1250_v13  ;;  %v1251_v19 = vadd.f32 0.001, %v1239_v18  ;;  %v1320_v4 = vld [vmem:[#allocation2 + $0x158] sm:$0xff]  ;;  %v1321_v5 = vld [vmem:[#allocation2 + $0x160] sm:$0xff] }
 0x268   : > { %v1252_v32 = vadd.f32 0.001, %v1240_v17  ;;  %v1283_v6 = vld [vmem:[#allocation2] sm:$0xff]  ;;  %v1284_v8 = vld [vmem:[#allocation2 + $0x8] sm:$0xff]  ;;  %v1285_v9 = vld [vmem:[#allocation2 + $0x10] sm:$0xff] }
 0x269   : > { %2032 = vrsqrt.f32 %v1248_v15  ;;  %v1286_v42 = vld [vmem:[#allocation2 + $0x18] sm:$0xff]  ;;  %v1287_v22 = vld [vmem:[#allocation2 + $0x20] sm:$0xff]  ;;  %v1288_v21 = vld [vmem:[#allocation2 + $0x28] sm:$0xff] }
 0x26a   : > { %2034 = vrsqrt.f32 %v1252_v32  ;;  %v1289_v11 = vld [vmem:[#allocation2 + $0x30] sm:$0xff]  ;;  %v1290_v18 = vld [vmem:[#allocation2 + $0x38] sm:$0xff]  ;;  %v1291_v32 = vld [vmem:[#allocation2 + $0x40] sm:$0xff] }
 0x26b   : > { %2036 = vrsqrt.f32 %v1251_v19  ;;  %v1292_v19 = vld [vmem:[#allocation2 + $0x48] sm:$0xff] }
 0x26f   : > { %v2027_v23 = vpop.eup %2026 }
 0x270   : > { %v2029_v25 = vpop.eup %2028  ;;  %v1261_v27 = vmul.f32 %v2027_v23, %v1243_v28  ;;  %v1293_v28 = vld [vmem:[#allocation2 + $0x50] sm:$0xff] }
 0x271   : > { %v2031_v33 = vpop.eup %2030  ;;  %v1259_v50 = vmul.f32 %v2029_v25, %v1241_v20 }
 0x272   : > { %1373 = vperm.xlu1 %2025, %v1261_v27   ;;  %v1262_v35 = vmul.f32 %v2031_v33, %v1244_v24  ;;  %v1273_v54 = vmul.f32 %v1261_v27, %v2870_v44  ;;  %v1270_v44 = vld [vmem:[%s3123_s3 + $0x28] sm:$0xff]  ;;  %v1295_v33 = vld [vmem:[#allocation2 + $0x60] sm:$0xff] }
 0x273   : > { %v2033_v34 = vpop.eup %2032  ;;  %1363 = vperm.xlu0 %2024, %v1259_v50   ;;  %v1271_v45 = vmul.f32 %v1259_v50, %v2872_v12  ;;  %v1268_v12 = vld [vmem:[%s3123_s3 + $0x18] sm:$0xff]  ;;  %v1322_v50 = vld [vmem:[#allocation2 + $0x180] sm:$0xff] }
 0x274   : > { %v1260_v47 = vmul.f32 %v2033_v34, %v1242_v29  ;;  %v2035_v37 = vpop.eup %2034  ;;  %v1274_v30 = vmul.f32 %v1262_v35, %v2876_v53  ;;  %v1279_v58 = vsub.f32 %v1267_v57, %v1273_v54  ;;  %v1294_v29 = vld [vmem:[#allocation2 + $0x58] sm:$0xff]  ;;  %v1323_v34 = vld [vmem:[#allocation2 + $0x188] sm:$0xff] }
 0x275   : > { %v2037_v39 = vpop.eup %2036  ;;  %v1264_v41 = vmul.f32 %v2035_v37, %v1246_v36  ;;  %v1277_v55 = vsub.f32 %v1265_v16, %v1271_v45  ;;  %v1327_v16 = vld [vmem:[#allocation2 + $0x1a8] sm:$0xff] }
 0x276   : > { %1378 = vperm.xlu1 %2025, %v1262_v35   ;;  %v1272_v56 = vmul.f32 %v1260_v47, %v1206_v26  ;;  %v1263_v51 = vmul.f32 %v2037_v39, %v1245_v38  ;;  %v1280_v1 = vsub.f32 %v1268_v12, %v1274_v30  ;;  %v1324_v38 = vld [vmem:[#allocation2 + $0x190] sm:$0xff]  ;;  %v1325_v39 = vld [vmem:[#allocation2 + $0x198] sm:$0xff] }
 0x277   : > { %1368 = vperm.xlu0 %2024, %v1260_v47   ;;  %v1276_v26 = vmul.f32 %v1264_v41, %v2882_v63  ;;  %v1313_v63 = vld [vmem:[#allocation2 + $0x120] sm:$0xff]  ;;  %v1329_v30 = vld [vmem:[#allocation2 + $0x1b8] sm:$0xff] }
 0x278   : > { %v1278_v49 = vsub.f32 %v1266_v46, %v1272_v56  ;;  %v1275_v53 = vmul.f32 %v1263_v51, %v2884_v3  ;;  %v1319_v3 = vld [vmem:[#allocation2 + $0x150] sm:$0xff] }
 0x279   : > { %v1282_v31 = vsub.f32 %v1270_v44, %v1276_v26  ;;  %v1330_v26 = vld [vmem:[#allocation2 + $0x1c0] sm:$0xff]  ;;  %v1332_v44 = vld [vmem:[#allocation2 + $0x1d0] sm:$0xff] }
 0x27a   : > { %1388 = vperm.xlu1 %2025, %v1264_v41   ;;  %v1281_v52 = vsub.f32 %v1269_v60, %v1275_v53  ;;  %v1326_v41 = vld [vmem:[#allocation2 + $0x1a0] sm:$0xff] }
 0x27b   : > { %1383 = vperm.xlu0 %2024, %v1263_v51  }
 0x27e   : > { %1476 = vperm.xlu1 %2025, %v1278_v49   ;;  %v1328_v49 = vld [vmem:[#allocation2 + $0x1b0] sm:$0xff] }
 0x27f   : > { %1471 = vperm.xlu0 %2024, %v1277_v55  }
 0x282   : > { %1486 = vperm.xlu1 %2025, %v1280_v1  }
 0x283   : > { %1481 = vperm.xlu0 %2024, %v1279_v58   ;;  %v1331_v58 = vld [vmem:[#allocation2 + $0x1c8] sm:$0xff] }
 0x286   : > { %1496 = vperm.xlu1 %2025, %v1282_v31  }
 0x287   : > { %1491 = vperm.xlu0 %2024, %v1281_v52  }
 0x2f1   : > { %v1374_v10 = vpop.permute.xlu1 %1373 }
 0x2f2   : > { %v2931_v13 = vmul.f32 %v1374_v10, %v1309_v61  ;;  %v2933_v14 = vmul.f32 %v1374_v10, %v1310_v43  ;;  %v2935_v15 = vmul.f32 %v1374_v10, %v1311_v62  ;;  %v2937_v17 = vmul.f32 %v1374_v10, %v1312_v40  ;;  %v1364_v20 = vpop.permute.xlu0 %1363  ;;  %v1333_v43 = vld [vmem:[#allocation2 + $0x1d8] sm:$0xff]  ;;  %v1334_v62 = vld [vmem:[#allocation2 + $0x1e0] sm:$0xff] }
 0x2f3   : > { %v2939_v23 = vmul.f32 %v1374_v10, %v1313_v63  ;;  %v2941_v24 = vmul.f32 %v1374_v10, %v1314_v0  ;;  %v2943_v25 = vmul.f32 %v1374_v10, %v1315_v59  ;;  %v2945_v27 = vmul.f32 %v1374_v10, %v1316_v7  ;;  %v1296_v40 = vld [vmem:[#allocation2 + $0x80] sm:$0xff] }
 0x2f4   : > { %v2947_v35 = vmul.f32 %v1374_v10, %v1317_v48  ;;  %v2949_v47 = vmul.f32 %v1374_v10, %v1318_v2  ;;  %v2951_v36 = vmul.f32 %v1374_v10, %v1319_v3  ;;  %v2953_v37 = vmul.f32 %v1374_v10, %v1320_v4  ;;  %v1297_v48 = vld [vmem:[#allocation2 + $0x88] sm:$0xff]  ;;  %v1298_v2 = vld [vmem:[#allocation2 + $0x90] sm:$0xff]  ;;  %v1299_v3 = vld [vmem:[#allocation2 + $0x98] sm:$0xff] }
 0x2f5   : > { %3140 = vst [vmem:[#allocation14_spill] sm:$0xff] %v2939_v23  ;;  %3141 = vst [vmem:[#allocation15_spill] sm:$0xff] %v2941_v24  ;;  %v2955_v56 = vmul.f32 %v1374_v10, %v1321_v5  ;;  %v2957_v45 = vmul.f32 %v1364_v20, %v1283_v6  ;;  %v2959_v51 = vmul.f32 %v1364_v20, %v1284_v8  ;;  %v1379_v54 = vpop.permute.xlu1 %1378  ;;  %v1301_v10 = vld [vmem:[#allocation2 + $0xa8] sm:$0xff] }
 0x2f6   : > { %3142 = vst [vmem:[#allocation16_spill] sm:$0xff] %v2943_v25  ;;  %3143 = vst [vmem:[#allocation17_spill] sm:$0xff] %v2945_v27  ;;  %v2961_v46 = vmul.f32 %v1364_v20, %v1285_v9  ;;  %v2963_v55 = vmul.f32 %v1364_v20, %v1286_v42  ;;  %v2965_v12 = vmul.f32 %v1364_v20, %v1287_v22  ;;  %v1369_v53 = vpop.permute.xlu0 %1368  ;;  %v1300_v9 = vld [vmem:[#allocation2 + $0xa0] sm:$0xff]  ;;  %v1302_v42 = vld [vmem:[#allocation2 + $0xb0] sm:$0xff] }
 0x2f7   : > { %3144 = vst [vmem:[#allocation18_spill] sm:$0xff] %v2947_v35  ;;  %3145 = vst [vmem:[#allocation19_spill] sm:$0xff] %v2949_v47  ;;  %v2967_v57 = vmul.f32 %v1364_v20, %v1288_v21  ;;  %v2969_v1 = vmul.f32 %v1364_v20, %v1289_v11  ;;  %v2971_v60 = vmul.f32 %v1364_v20, %v1290_v18 }
 0x2f8   : > { %3146 = vst [vmem:[#allocation20_spill] sm:$0xff] %v2951_v36  ;;  %3147 = vst [vmem:[#allocation21_spill] sm:$0xff] %v2953_v37  ;;  %v2973_v31 = vmul.f32 %v1364_v20, %v1291_v32  ;;  %v2975_v52 = vmul.f32 %v1364_v20, %v1292_v19  ;;  %v2977_v61 = vmul.f32 %v1364_v20, %v1293_v28  ;;  %v1303_v19 = vld [vmem:[#allocation2 + $0xb8] sm:$0xff]  ;;  %v1304_v28 = vld [vmem:[#allocation2 + $0xc0] sm:$0xff] }
 0x2f9   : > { %3148 = vst [vmem:[#allocation22_spill] sm:$0xff] %v2955_v56  ;;  %v2979_v63 = vmul.f32 %v1364_v20, %v1294_v29  ;;  %v2981_v0 = vmul.f32 %v1364_v20, %v1295_v33  ;;  %v2983_v59 = vmul.f32 %v1379_v54, %v1322_v50  ;;  %v2985_v7 = vmul.f32 %v1379_v54, %v1323_v34  ;;  %v2995_v22 = vpop.permute.xlu1 %1388  ;;  %v1305_v20 = vld [vmem:[#allocation2 + $0xc8] sm:$0xff] }
 0x2fa   : > { %v2987_v4 = vmul.f32 %v1379_v54, %v1324_v38  ;;  %v2989_v5 = vmul.f32 %v1379_v54, %v1325_v39  ;;  %v2991_v6 = vmul.f32 %v1379_v54, %v1326_v41  ;;  %v2993_v8 = vmul.f32 %v1379_v54, %v1327_v16  ;;  %3149 = vst [vmem:[#allocation23_spill] sm:$0xff] %v2995_v22  ;;  %v3005_v29 = vpop.permute.xlu0 %1383  ;;  %v1306_v38 = vld [vmem:[#allocation2 + $0xd0] sm:$0xff]  ;;  %v1307_v39 = vld [vmem:[#allocation2 + $0xd8] sm:$0xff]  ;;  %v1308_v41 = vld [vmem:[#allocation2 + $0xe0] sm:$0xff] }
 0x2fb   : > { %v2997_v21 = vmul.f32 %v1379_v54, %v1328_v49  ;;  %v2999_v11 = vmul.f32 %v1379_v54, %v1329_v30  ;;  %v3001_v18 = vmul.f32 %v1379_v54, %v1330_v26  ;;  %v3003_v32 = vmul.f32 %v1379_v54, %v1331_v58  ;;  %3150 = vst [vmem:[#allocation24_spill] sm:$0xff] %v3005_v29 }
 0x2fc   : > { %v3007_v33 = vmul.f32 %v1379_v54, %v1332_v44  ;;  %v3009_v50 = vmul.f32 %v1379_v54, %v1333_v43  ;;  %v3011_v34 = vmul.f32 %v1379_v54, %v1334_v62  ;;  %v1404_v16 = vmul.f32 %v1369_v53, %v1296_v40 }
 0x2fd   : > { %v1405_v49 = vmul.f32 %v1369_v53, %v1297_v48  ;;  %v1406_v30 = vmul.f32 %v1369_v53, %v1298_v2  ;;  %v1407_v26 = vmul.f32 %v1369_v53, %v1299_v3  ;;  %v1408_v58 = vmul.f32 %v1369_v53, %v1300_v9  ;;  %v1477_v47 = vpop.permute.xlu1 %1476 }
 0x2fe   : > { %v1409_v22 = vmul.f32 %v1369_v53, %v1301_v10  ;;  %v1410_v56 = vmul.f32 %v1369_v53, %v1302_v42  ;;  %v1411_v37 = vmul.f32 %v1369_v53, %v1303_v19  ;;  %v1412_v36 = vmul.f32 %v1369_v53, %v1304_v28  ;;  %v1472_v24 = vpop.permute.xlu0 %1471 }
 0x2ff   : > { %v1413_v29 = vmul.f32 %v1369_v53, %v1305_v20  ;;  %v1414_v44 = vmul.f32 %v1369_v53, %v1306_v38  ;;  %v1415_v35 = vmul.f32 %v1369_v53, %v1307_v39  ;;  %v1416_v43 = vmul.f32 %v1369_v53, %v1308_v41  ;;  %v3151_v20 = vld [vmem:[#allocation14_spill] sm:$0xff]  ;;  %v3153_v39 = vld [vmem:[#allocation16_spill] sm:$0xff] }
 0x300   : > { %v1512_v27 = vadd.f32 %v1477_v47, %v1404_v16  ;;  %v1513_v54 = vadd.f32 %v1477_v47, %v1405_v49  ;;  %v1514_v62 = vadd.f32 %v1477_v47, %v1406_v30  ;;  %v1515_v25 = vadd.f32 %v1477_v47, %v1407_v26  ;;  %v3154_v16 = vld [vmem:[#allocation17_spill] sm:$0xff]  ;;  %v1356_v26 = vld [vmem:[#allocation2 + $0x2c0] sm:$0xff] }
 0x301   : > { %v1516_v23 = vadd.f32 %v1477_v47, %v1408_v58  ;;  %v1517_v40 = vadd.f32 %v1477_v47, %v1409_v22  ;;  %v1518_v48 = vadd.f32 %v1477_v47, %v1410_v56  ;;  %v1519_v2 = vadd.f32 %v1477_v47, %v1411_v37  ;;  %v1487_v37 = vpop.permute.xlu1 %1486  ;;  %v1349_v22 = vld [vmem:[#allocation2 + $0x288] sm:$0xff]  ;;  %v3156_v58 = vld [vmem:[#allocation19_spill] sm:$0xff] }
 0x302   : > { %v1520_v3 = vadd.f32 %v1477_v47, %v1412_v36  ;;  %v1521_v9 = vadd.f32 %v1477_v47, %v1413_v29  ;;  %v1522_v10 = vadd.f32 %v1477_v47, %v1414_v44  ;;  %v1523_v42 = vadd.f32 %v1477_v47, %v1415_v35  ;;  %1590 = vst [vmem:[#allocation10 + $0x68] sm:$0xff] %v1512_v27 }
 0x303   : > { %1591 = vst [vmem:[#allocation10 + $0x70] sm:$0xff] %v1513_v54  ;;  %1592 = vst [vmem:[#allocation10 + $0x78] sm:$0xff] %v1514_v62  ;;  %v1524_v19 = vadd.f32 %v1477_v47, %v1416_v43  ;;  %v1499_v53 = vadd.f32 %v1472_v24, %v2957_v45  ;;  %v1500_v28 = vadd.f32 %v1472_v24, %v2959_v51  ;;  %v3157_v43 = vld [vmem:[#allocation20_spill] sm:$0xff]  ;;  %v3158_v62 = vld [vmem:[#allocation21_spill] sm:$0xff] }
 0x304   : > { %1593 = vst [vmem:[#allocation10 + $0x80] sm:$0xff] %v1515_v25  ;;  %1594 = vst [vmem:[#allocation10 + $0x88] sm:$0xff] %v1516_v23  ;;  %v1501_v56 = vadd.f32 %v1472_v24, %v2961_v46  ;;  %v1502_v27 = vadd.f32 %v1472_v24, %v2963_v55  ;;  %v1503_v25 = vadd.f32 %v1472_v24, %v2965_v12 }
 0x305   : > { %1595 = vst [vmem:[#allocation10 + $0x90] sm:$0xff] %v1517_v40  ;;  %1596 = vst [vmem:[#allocation10 + $0x98] sm:$0xff] %v1518_v48  ;;  %v1504_v23 = vadd.f32 %v1472_v24, %v2967_v57  ;;  %v1505_v35 = vadd.f32 %v1472_v24, %v2969_v1  ;;  %v1506_v47 = vadd.f32 %v1472_v24, %v2971_v60  ;;  %v1482_v1 = vpop.permute.xlu0 %1481  ;;  %v3159_v48 = vld [vmem:[#allocation22_spill] sm:$0xff] }
 0x306   : > { %1597 = vst [vmem:[#allocation10 + $0xa0] sm:$0xff] %v1519_v2  ;;  %1598 = vst [vmem:[#allocation10 + $0xa8] sm:$0xff] %v1520_v3  ;;  %v1507_v36 = vadd.f32 %v1472_v24, %v2973_v31  ;;  %v1508_v45 = vadd.f32 %v1472_v24, %v2975_v52  ;;  %v1509_v51 = vadd.f32 %v1472_v24, %v2977_v61  ;;  %v1357_v3 = vld [vmem:[#allocation2 + $0x2c8] sm:$0xff] }
 0x307   : > { %1599 = vst [vmem:[#allocation10 + $0xb0] sm:$0xff] %v1521_v9  ;;  %1600 = vst [vmem:[#allocation10 + $0xb8] sm:$0xff] %v1522_v10  ;;  %v1510_v46 = vadd.f32 %v1472_v24, %v2979_v63  ;;  %v1511_v55 = vadd.f32 %v1472_v24, %v2981_v0  ;;  %v1538_v12 = vadd.f32 %v1487_v37, %v2983_v59  ;;  %v1358_v9 = vld [vmem:[#allocation2 + $0x2d0] sm:$0xff]  ;;  %v1359_v10 = vld [vmem:[#allocation2 + $0x2d8] sm:$0xff] }
 0x308   : > { %1601 = vst [vmem:[#allocation10 + $0xc0] sm:$0xff] %v1523_v42  ;;  %1602 = vst.msk [vmem:[#allocation10 + $0xc8] sm:$0xff] %vm452_vm1, %v1524_v19  ;;  %v1539_v57 = vadd.f32 %v1487_v37, %v2985_v7  ;;  %v1540_v60 = vadd.f32 %v1487_v37, %v2987_v4  ;;  %v1541_v31 = vadd.f32 %v1487_v37, %v2989_v5  ;;  %v1360_v42 = vld [vmem:[#allocation2 + $0x2e0] sm:$0xff]  ;;  %v3160_v19 = vld [vmem:[#allocation23_spill] sm:$0xff] }
 0x309   : > { %1577 = vst [vmem:[#allocation10] sm:$0xff] %v1499_v53  ;;  %1578 = vst [vmem:[#allocation10 + $0x8] sm:$0xff] %v1500_v28  ;;  %v1542_v52 = vadd.f32 %v1487_v37, %v2991_v6  ;;  %v1543_v24 = vadd.f32 %v1487_v37, %v2993_v8  ;;  %v1544_v61 = vadd.f32 %v1487_v37, %v2997_v21  ;;  %v1348_v8 = vld [vmem:[#allocation2 + $0x280] sm:$0xff]  ;;  %v1350_v21 = vld [vmem:[#allocation2 + $0x290] sm:$0xff] }
 0x30a   : > { %1579 = vst [vmem:[#allocation10 + $0x10] sm:$0xff] %v1501_v56  ;;  %1580 = vst [vmem:[#allocation10 + $0x18] sm:$0xff] %v1502_v27  ;;  %v1545_v63 = vadd.f32 %v1487_v37, %v2999_v11  ;;  %v1546_v0 = vadd.f32 %v1487_v37, %v3001_v18  ;;  %v1547_v59 = vadd.f32 %v1487_v37, %v3003_v32  ;;  %v1497_v27 = vpop.permute.xlu1 %1496 }
 0x30b   : > { %1581 = vst [vmem:[#allocation10 + $0x20] sm:$0xff] %v1503_v25  ;;  %1582 = vst [vmem:[#allocation10 + $0x28] sm:$0xff] %v1504_v23  ;;  %v1548_v7 = vadd.f32 %v1487_v37, %v3007_v33  ;;  %v1549_v4 = vadd.f32 %v1487_v37, %v3009_v50  ;;  %v1550_v5 = vadd.f32 %v1487_v37, %v3011_v34  ;;  %v1351_v33 = vld [vmem:[#allocation2 + $0x298] sm:$0xff]  ;;  %v1352_v50 = vld [vmem:[#allocation2 + $0x2a0] sm:$0xff] }
 0x30c   : > { %1583 = vst [vmem:[#allocation10 + $0x30] sm:$0xff] %v1505_v35  ;;  %1584 = vst [vmem:[#allocation10 + $0x38] sm:$0xff] %v1506_v47  ;;  %v1525_v6 = vadd.f32 %v1482_v1, %v2931_v13  ;;  %v1526_v11 = vadd.f32 %v1482_v1, %v2933_v14  ;;  %v1527_v18 = vadd.f32 %v1482_v1, %v2935_v15  ;;  %v1353_v34 = vld [vmem:[#allocation2 + $0x2a8] sm:$0xff]  ;;  %v3152_v13 = vld [vmem:[#allocation15_spill] sm:$0xff] }
 0x30d   : > { %1585 = vst [vmem:[#allocation10 + $0x40] sm:$0xff] %v1507_v36  ;;  %1586 = vst [vmem:[#allocation10 + $0x48] sm:$0xff] %v1508_v45  ;;  %v1528_v32 = vadd.f32 %v1482_v1, %v2937_v17  ;;  %v1529_v29 = vadd.f32 %v1482_v1, %v3151_v20  ;;  %v1530_v38 = vadd.f32 %v1482_v1, %v3152_v13  ;;  %v3155_v14 = vld [vmem:[#allocation18_spill] sm:$0xff]  ;;  %v1355_v17 = vld [vmem:[#allocation2 + $0x2b8] sm:$0xff] }
 0x30e   : > { %1587 = vst [vmem:[#allocation10 + $0x50] sm:$0xff] %v1509_v51  ;;  %1588 = vst [vmem:[#allocation10 + $0x58] sm:$0xff] %v1510_v46  ;;  %v1531_v41 = vadd.f32 %v1482_v1, %v3153_v39  ;;  %v1532_v49 = vadd.f32 %v1482_v1, %v3154_v16  ;;  %v1533_v30 = vadd.f32 %v1482_v1, %v3155_v14  ;;  %v1354_v15 = vld [vmem:[#allocation2 + $0x2b0] sm:$0xff]  ;;  %v3161_v13 = vld [vmem:[#allocation24_spill] sm:$0xff] }
 0x30f   : > { %1589 = vst.msk [vmem:[#allocation10 + $0x60] sm:$0xff] %vm452_vm1, %v1511_v55  ;;  %1616 = vst [vmem:[#allocation10 + $0x138] sm:$0xff] %v1538_v12  ;;  %v1534_v44 = vadd.f32 %v1482_v1, %v3156_v58  ;;  %v1535_v54 = vadd.f32 %v1482_v1, %v3157_v43  ;;  %v1536_v40 = vadd.f32 %v1482_v1, %v3158_v62  ;;  %v1335_v55 = vld [vmem:[#allocation2 + $0x200] sm:$0xff] }
 0x310   : > { %1617 = vst [vmem:[#allocation10 + $0x140] sm:$0xff] %v1539_v57  ;;  %1618 = vst [vmem:[#allocation10 + $0x148] sm:$0xff] %v1540_v60  ;;  %v1537_v2 = vadd.f32 %v1482_v1, %v3159_v48  ;;  %v1456_v53 = vmul.f32 %v3160_v19, %v1348_v8  ;;  %v1457_v28 = vmul.f32 %v3160_v19, %v1349_v22 }
 0x311   : > { %1619 = vst [vmem:[#allocation10 + $0x150] sm:$0xff] %v1541_v31  ;;  %1620 = vst [vmem:[#allocation10 + $0x158] sm:$0xff] %v1542_v52  ;;  %v1458_v56 = vmul.f32 %v3160_v19, %v1350_v21  ;;  %v1459_v37 = vmul.f32 %v3160_v19, %v1351_v33  ;;  %v1460_v25 = vmul.f32 %v3160_v19, %v1352_v50  ;;  %v1336_v31 = vld [vmem:[#allocation2 + $0x208] sm:$0xff]  ;;  %v1337_v52 = vld [vmem:[#allocation2 + $0x210] sm:$0xff] }
 0x312   : > { %1621 = vst [vmem:[#allocation10 + $0x160] sm:$0xff] %v1543_v24  ;;  %1622 = vst [vmem:[#allocation10 + $0x168] sm:$0xff] %v1544_v61  ;;  %v1461_v23 = vmul.f32 %v3160_v19, %v1353_v34  ;;  %v1462_v35 = vmul.f32 %v3160_v19, %v1354_v15  ;;  %v1463_v47 = vmul.f32 %v3160_v19, %v1355_v17  ;;  %v1338_v24 = vld [vmem:[#allocation2 + $0x218] sm:$0xff]  ;;  %v1345_v33 = vld [vmem:[#allocation2 + $0x250] sm:$0xff] }
 0x313   : > { %1623 = vst [vmem:[#allocation10 + $0x170] sm:$0xff] %v1545_v63  ;;  %1624 = vst [vmem:[#allocation10 + $0x178] sm:$0xff] %v1546_v0  ;;  %v1464_v36 = vmul.f32 %v3160_v19, %v1356_v26  ;;  %v1465_v45 = vmul.f32 %v3160_v19, %v1357_v3  ;;  %v1466_v51 = vmul.f32 %v3160_v19, %v1358_v9  ;;  %v1346_v50 = vld [vmem:[#allocation2 + $0x258] sm:$0xff]  ;;  %v1347_v34 = vld [vmem:[#allocation2 + $0x260] sm:$0xff] }
 0x314   : > { %1625 = vst [vmem:[#allocation10 + $0x180] sm:$0xff] %v1547_v59  ;;  %1626 = vst [vmem:[#allocation10 + $0x188] sm:$0xff] %v1548_v7  ;;  %v1467_v46 = vmul.f32 %v3160_v19, %v1359_v10  ;;  %v1468_v12 = vmul.f32 %v3160_v19, %v1360_v42  ;;  %v1564_v57 = vadd.f32 %v1497_v27, %v1456_v53  ;;  %v1339_v7 = vld [vmem:[#allocation2 + $0x220] sm:$0xff] }
 0x315   : > { %1627 = vst [vmem:[#allocation10 + $0x190] sm:$0xff] %v1549_v4  ;;  %1628 = vst.msk [vmem:[#allocation10 + $0x198] sm:$0xff] %vm452_vm1, %v1550_v5  ;;  %v1565_v1 = vadd.f32 %v1497_v27, %v1457_v28  ;;  %v1566_v60 = vadd.f32 %v1497_v27, %v1458_v56  ;;  %v1567_v61 = vadd.f32 %v1497_v27, %v1459_v37  ;;  %v1340_v4 = vld [vmem:[#allocation2 + $0x228] sm:$0xff]  ;;  %v1341_v5 = vld [vmem:[#allocation2 + $0x230] sm:$0xff] }
 0x316   : > { %1603 = vst [vmem:[#allocation10 + $0xd0] sm:$0xff] %v1525_v6  ;;  %1604 = vst [vmem:[#allocation10 + $0xd8] sm:$0xff] %v1526_v11  ;;  %v1568_v63 = vadd.f32 %v1497_v27, %v1460_v25  ;;  %v1569_v0 = vadd.f32 %v1497_v27, %v1461_v23  ;;  %v1570_v59 = vadd.f32 %v1497_v27, %v1462_v35  ;;  %v1342_v11 = vld [vmem:[#allocation2 + $0x238] sm:$0xff] }
 0x317   : > { %1605 = vst [vmem:[#allocation10 + $0xe0] sm:$0xff] %v1527_v18  ;;  %1606 = vst [vmem:[#allocation10 + $0xe8] sm:$0xff] %v1528_v32  ;;  %v1571_v6 = vadd.f32 %v1497_v27, %v1463_v47  ;;  %v1572_v8 = vadd.f32 %v1497_v27, %v1464_v36  ;;  %v1573_v22 = vadd.f32 %v1497_v27, %v1465_v45  ;;  %v1343_v18 = vld [vmem:[#allocation2 + $0x240] sm:$0xff]  ;;  %v1344_v32 = vld [vmem:[#allocation2 + $0x248] sm:$0xff] }
 0x318   : > { %1607 = vst [vmem:[#allocation10 + $0xf0] sm:$0xff] %v1529_v29  ;;  %1608 = vst [vmem:[#allocation10 + $0xf8] sm:$0xff] %v1530_v38  ;;  %v1574_v21 = vadd.f32 %v1497_v27, %v1466_v51  ;;  %v1575_v20 = vadd.f32 %v1497_v27, %v1467_v46  ;;  %v1576_v29 = vadd.f32 %v1497_v27, %v1468_v12 }
 0x319   : > { %1609 = vst [vmem:[#allocation10 + $0x100] sm:$0xff] %v1531_v41  ;;  %1610 = vst [vmem:[#allocation10 + $0x108] sm:$0xff] %v1532_v49  ;;  %v1443_v38 = vmul.f32 %v3161_v13, %v1335_v55  ;;  %v1444_v39 = vmul.f32 %v3161_v13, %v1336_v31  ;;  %v1492_v41 = vpop.permute.xlu0 %1491  ;;  %v1445_v16 = vmul.f32 %v3161_v13, %v1337_v52 }
 0x31a   : > { %1611 = vst [vmem:[#allocation10 + $0x110] sm:$0xff] %v1533_v30  ;;  %1612 = vst [vmem:[#allocation10 + $0x118] sm:$0xff] %v1534_v44  ;;  %v1446_v49 = vmul.f32 %v3161_v13, %v1338_v24  ;;  %v1447_v14 = vmul.f32 %v3161_v13, %v1339_v7  ;;  %v1448_v30 = vmul.f32 %v3161_v13, %v1340_v4 }
 0x31b   : > { %1613 = vst [vmem:[#allocation10 + $0x120] sm:$0xff] %v1535_v54  ;;  %1614 = vst [vmem:[#allocation10 + $0x128] sm:$0xff] %v1536_v40  ;;  %v1449_v15 = vmul.f32 %v3161_v13, %v1341_v5  ;;  %v1450_v17 = vmul.f32 %v3161_v13, %v1342_v11  ;;  %v1451_v26 = vmul.f32 %v3161_v13, %v1343_v18 }
 0x31c   : > { %1615 = vst.msk [vmem:[#allocation10 + $0x130] sm:$0xff] %vm452_vm1, %v1537_v2  ;;  %1642 = vst [vmem:[#allocation10 + $0x208] sm:$0xff] %v1564_v57  ;;  %v1452_v58 = vmul.f32 %v3161_v13, %v1344_v32  ;;  %v1453_v44 = vmul.f32 %v3161_v13, %v1345_v33  ;;  %v1454_v43 = vmul.f32 %v3161_v13, %v1346_v50 }
 0x31d   : > { %1643 = vst [vmem:[#allocation10 + $0x210] sm:$0xff] %v1565_v1  ;;  %1644 = vst [vmem:[#allocation10 + $0x218] sm:$0xff] %v1566_v60  ;;  %v1455_v54 = vmul.f32 %v3161_v13, %v1347_v34  ;;  %v1551_v62 = vadd.f32 %v1492_v41, %v1443_v38  ;;  %v1552_v40 = vadd.f32 %v1492_v41, %v1444_v39 }
 0x31e   : > { %1645 = vst [vmem:[#allocation10 + $0x220] sm:$0xff] %v1567_v61  ;;  %1646 = vst [vmem:[#allocation10 + $0x228] sm:$0xff] %v1568_v63  ;;  %v1553_v48 = vadd.f32 %v1492_v41, %v1445_v16  ;;  %v1554_v2 = vadd.f32 %v1492_v41, %v1446_v49  ;;  %v1555_v3 = vadd.f32 %v1492_v41, %v1447_v14 }
 0x31f   : > { %1647 = vst [vmem:[#allocation10 + $0x230] sm:$0xff] %v1569_v0  ;;  %1648 = vst [vmem:[#allocation10 + $0x238] sm:$0xff] %v1570_v59  ;;  %v1556_v9 = vadd.f32 %v1492_v41, %v1448_v30  ;;  %v1557_v10 = vadd.f32 %v1492_v41, %v1449_v15  ;;  %v1558_v42 = vadd.f32 %v1492_v41, %v1450_v17 }
 0x320   : > { %1649 = vst [vmem:[#allocation10 + $0x240] sm:$0xff] %v1571_v6  ;;  %1650 = vst [vmem:[#allocation10 + $0x248] sm:$0xff] %v1572_v8  ;;  %v1559_v19 = vadd.f32 %v1492_v41, %v1451_v26  ;;  %v1560_v53 = vadd.f32 %v1492_v41, %v1452_v58  ;;  %v1561_v28 = vadd.f32 %v1492_v41, %v1453_v44 }
 0x321   : > { %1651 = vst [vmem:[#allocation10 + $0x250] sm:$0xff] %v1573_v22  ;;  %1652 = vst [vmem:[#allocation10 + $0x258] sm:$0xff] %v1574_v21  ;;  %v1562_v56 = vadd.f32 %v1492_v41, %v1454_v43  ;;  %v1563_v37 = vadd.f32 %v1492_v41, %v1455_v54 }
 0x322   : > { %1653 = vst [vmem:[#allocation10 + $0x260] sm:$0xff] %v1575_v20  ;;  %1654 = vst.msk [vmem:[#allocation10 + $0x268] sm:$0xff] %vm452_vm1, %v1576_v29 }
 0x323   : > { %1629 = vst [vmem:[#allocation10 + $0x1a0] sm:$0xff] %v1551_v62  ;;  %1630 = vst [vmem:[#allocation10 + $0x1a8] sm:$0xff] %v1552_v40 }
 0x324   : > { %1631 = vst [vmem:[#allocation10 + $0x1b0] sm:$0xff] %v1553_v48  ;;  %1632 = vst [vmem:[#allocation10 + $0x1b8] sm:$0xff] %v1554_v2 }
 0x325   : > { %1633 = vst [vmem:[#allocation10 + $0x1c0] sm:$0xff] %v1555_v3  ;;  %1634 = vst [vmem:[#allocation10 + $0x1c8] sm:$0xff] %v1556_v9 }
 0x326   : > { %1635 = vst [vmem:[#allocation10 + $0x1d0] sm:$0xff] %v1557_v10  ;;  %1636 = vst [vmem:[#allocation10 + $0x1d8] sm:$0xff] %v1558_v42 }
 0x327   : > { %1637 = vst [vmem:[#allocation10 + $0x1e0] sm:$0xff] %v1559_v19  ;;  %1638 = vst [vmem:[#allocation10 + $0x1e8] sm:$0xff] %v1560_v53 }
 0x328   : > { %1639 = vst [vmem:[#allocation10 + $0x1f0] sm:$0xff] %v1561_v28  ;;  %1640 = vst [vmem:[#allocation10 + $0x1f8] sm:$0xff] %v1562_v56 }
 0x329   : > { %1641 = vst.msk [vmem:[#allocation10 + $0x200] sm:$0xff] %vm452_vm1, %v1563_v37 }
 0x32a PF: > { %p1980_p7 = scmp.eq.s32.totalorder %s2219_s19, 1  ;;  %s2172_s11 = smov [#allocation10]  }
 0x32b   : > { %s1661_s14 = sshll.u32 %s2172_s11, 4  ;;  %s1662_s14 = int_to_ptr.vmem [resolvable:$true] %s1661_s14 }
 0x32c   : > { %s2094_s15 = scalar_lea.vmem %s1662_s14, 9984  ;;  %p2101_p4 = scmp.lt.s32.totalorder %s1662_s14, %s1662_s14 }
 0x32d   : > { %p2095_p11 = scmp.ne.s32.totalorder %s1662_s14, %s2094_s15  ;;  %p2102_p8 = scmp.lt.s32.totalorder %s2094_s15, %s2094_s15 }
 0x32f   : > { %p2096_p13 = pnand %p2095_p11, %p1980_p7  ;;  %p2103_p9 = por %p2102_p8, %p2101_p4 }
 0x331   : > { %p2097_p1 = pneg %p2096_p13 }
 0x333   : > { %p2104_p12 = pnand %p2103_p9, %p2097_p1 }
 0x335   : > { %2107 = shalt.err (!%p2104_p12)
}
 0x336   : > { %s2108_s27 = scalar_lea.hbm %s3124_s4, 9984 }
 0x337   : > { %p2109_p10 = scmp.ne.s32.totalorder %s3124_s4, %s2108_s27  ;;  %p2114_p5 = scmp.lt.u32.totalorder %s2108_s27, %s3124_s4 }
 0x339   : > { %p2110_p0 = pnand %p2109_p10, %p1980_p7 }
 0x33b   : > { %p2111_p2 = pneg %p2110_p0 }
 0x33d   : > { %p2116_p3 = pnand %p2114_p5, %p2111_p2 }
 0x33f   : > { %2119 = shalt.err (!%p2116_p3)
}
 0x340   : > { %s2173_s8 = smov 1664   ;;  %s2174_s12 = smov 104  }
 0x341   : > { %1971 = dma.vmem_to_hbm [thread:$0]  (%p1980_p7), %s1662_s14, 9984, %s3124_s4, [#allocation7], %s2173_s8, %s2173_s8, %s2174_s12  }
 0x342   : > { %2145 = dma.done.wait (%p1980_p7), [#allocation7], 9984  }
 0x343   : > { %2147 = vsyncadd (%p1980_p7), [#allocation7], 4294957312 }
 0x344 PF: > { %p16_p6 = scmp.ge.s32.totalorder %s2222_s20, 4   ;;  %s3162_s15 = smov %s2154_s16 }
 0x345   : > { %s3163_s16 = smov %s2158_s17  ;;  %s3164_s17 = smov %s2232_s23 }
 0x346   : > { %s3165_s18 = smov %s2222_s20  ;;  %18 = sbr.rel (!%p16_p6) target bundleno = 5 (0x5), region = 86 }
 0x34d   :  { %1677 = vsyncpa [#allocation6], 1 }
 0x34e   :  { %1679 = vsyncpa [#allocation6 + $0x1], 1 }
 0x34f   :  { %1680 = vsyncpa [#allocation9], 1 }
 0x350   :  { %1681 = vsyncpa [#allocation7], 1 }
 0x351   :  { %1683 = vsyncpa [#allocation7 + $0x1], 1 }

</bundles_post_ra>
